<compile_context>
chip_gen: v7x
topology: tpu7x:2x2x1
jax: 0.10.0
libtpu: 0.0.40
codegen_flags: <defaults>
</compile_context>

<pallas_src>
import functools
import math

import jax
import jax.numpy as jnp
import numpy as np
from jax.experimental import pallas as pl
from jax.experimental.pallas import tpu as pltpu


# ----------------------------- Pallas kernel ------------------------------ #
def _attention_block_kernel(x_ref, gnw_ref, gnb_ref,
                            wqkv_ref, bqkv_ref,
                            wp_ref, bproj_ref,
                            out_ref,
                            q_ref, k_ref, v_ref, att_ref,
                            *, n_heads, n_groups, eps, t_valid, tq):
    _, C, t_pad = x_ref.shape
    cg = C // n_groups
    ch = C // n_heads
    n_qt = t_pad // tq

    # ---------------- GroupNorm32 (f32 stats, biased variance) -------------
    # One vectorized pass: per-row sum / sum-of-squares, tiny scalar per-group
    # reduction (padded columns are zero and excluded via t_valid).
    x = x_ref[0].astype(jnp.float32)                       # [C, Tp]
    row_sum = jnp.sum(x, axis=1, keepdims=True)            # [C, 1]
    row_sq = jnp.sum(x * x, axis=1, keepdims=True)         # [C, 1]
    inv_n = 1.0 / float(cg * t_valid)
    mu_parts, rs_parts = [], []
    for g in range(n_groups):                              # tiny scalar loop
        s1 = jnp.sum(row_sum[g * cg:(g + 1) * cg, :])
        s2 = jnp.sum(row_sq[g * cg:(g + 1) * cg, :])
        mu = s1 * inv_n
        var = s2 * inv_n - mu * mu
        rstd = jax.lax.rsqrt(var + eps)
        ones = jnp.ones((cg, 1), jnp.float32)
        mu_parts.append(mu * ones)
        rs_parts.append(rstd * ones)
    mu_c = jnp.concatenate(mu_parts, axis=0)               # [C, 1] (tiny)
    rs_c = jnp.concatenate(rs_parts, axis=0)               # [C, 1]
    xn = (x - mu_c) * (rs_c * gnw_ref[...]) + gnb_ref[...]
    xn_bf = xn.astype(jnp.bfloat16)                        # bf16 MXU operand

    # ---------------- fused QKV: one big MXU matmul -------------------------
    # wqkv rows are reordered head-major on the host: [q (C rows), k, v];
    # q/k scale (1/ch**0.25) already folded in.
    qkv = jnp.dot(wqkv_ref[...], xn_bf,
                  preferred_element_type=jnp.float32) + bqkv_ref[...]   # [3C, Tp]
    q_ref[...] = qkv[0 * C:1 * C].reshape(n_heads, ch, t_pad).astype(jnp.bfloat16)
    k_ref[...] = qkv[1 * C:2 * C].reshape(n_heads, ch, t_pad).astype(jnp.bfloat16)
    v_ref[...] = qkv[2 * C:3 * C].reshape(n_heads, ch, t_pad).astype(jnp.bfloat16)

    # ---------------- attention per head, tiled over query blocks ----------
    def head_body(h, carry):
        k_h = k_ref[h]                                     # [ch, Tp] bf16
        v_h = v_ref[h]                                     # [ch, Tp] bf16

        def q_body(qb, c2):
            off = pl.multiple_of(qb * tq, 128)
            q_t = q_ref[h, :, pl.ds(off, tq)]              # [ch, tq] bf16
            # scores[t, s] = sum_c q[c, t] * k[c, s]   (no transpose emitted)
            s = jax.lax.dot_general(q_t, k_h, (((0,), (0,)), ((), ())),
                                    preferred_element_type=jnp.float32)  # [tq, Tp]
            if t_pad != t_valid:                           # mask padded key columns
                col = jax.lax.broadcasted_iota(jnp.int32, (tq, t_pad), 1)
                s = jnp.where(col < t_valid, s, -1e30)
            # exact softmax over full key extent (f32), reciprocal on the EUP
            m = jnp.max(s, axis=-1, keepdims=True)
            e = jnp.exp(s - m)
            p = e * pl.reciprocal(jnp.sum(e, axis=-1, keepdims=True), approx=True)
            # a[c, t] = sum_s v[c, s] * p[t, s]          (no transpose emitted)
            a_t = jax.lax.dot_general(v_h, p.astype(jnp.bfloat16),
                                      (((1,), (1,)), ((), ())),
                                      preferred_element_type=jnp.float32)  # [ch, tq]
            att_ref[h, :, pl.ds(off, tq)] = a_t.astype(jnp.bfloat16)
            return c2

        return jax.lax.fori_loop(0, n_qt, q_body, carry)

    jax.lax.fori_loop(0, n_heads, head_body, 0)

    # ---------------- single fused projection + bias + residual ------------
    a_all = att_ref[...].reshape(C, t_pad)                 # [C, Tp] bf16, head-major rows
    proj = jnp.dot(wp_ref[...], a_all,
                   preferred_element_type=jnp.float32)     # [C, Tp] f32
    out_ref[0] = (x_ref[0].astype(jnp.float32) + proj + bproj_ref[...]).astype(out_ref.dtype)


# ------------------------------- wrapper ----------------------------------- #
def attention_block(x, params, *, n_heads, n_groups, eps=1e-5):
    """x: [B, C, W, H] -> [B, C, W, H]."""
    B, C, W, Hs = x.shape
    assert C % n_heads == 0 and C % n_groups == 0
    ch = C // n_heads
    T = W * Hs
    Tp = ((T + 127) // 128) * 128                        # lane-dense padding

    x3 = x.reshape(B, C, T)
    if Tp != T:
        x3 = jnp.pad(x3, ((0, 0), (0, 0), (0, Tp - T)))

    # query-tile size: divisor of Tp, multiple of 128, at most 512
    if Tp <= 512:
        tq = Tp
    elif Tp % 512 == 0:
        tq = 512
    elif Tp % 256 == 0:
        tq = 256
    else:
        tq = 128

    scale = 1.0 / math.sqrt(math.sqrt(ch))

    # Legacy QKV row order per head h: [q rows (ch), k rows (ch), v rows (ch)].
    # Reorder to head-major-within-component so one fused matmul emits
    # [q_all; k_all; v_all] with rows h*ch:(h+1)*ch belonging to head h.
    w_qkv = params["w_qkv"].astype(jnp.float32).reshape(n_heads, 3, ch, C)
    b_qkv = params["b_qkv"].astype(jnp.float32).reshape(n_heads, 3, ch, 1)
    wqkv = jnp.concatenate(
        [(w_qkv[:, 0] * scale).reshape(C, C),             # q (scale folded)
         (w_qkv[:, 1] * scale).reshape(C, C),             # k (scale folded)
         w_qkv[:, 2].reshape(C, C)],                      # v
        axis=0).astype(jnp.bfloat16)                      # [3C, C]
    bqkv = jnp.concatenate(
        [(b_qkv[:, 0] * scale).reshape(C, 1),
         (b_qkv[:, 1] * scale).reshape(C, 1),
         b_qkv[:, 2].reshape(C, 1)],
        axis=0)                                           # [3C, 1] f32

    # proj weight columns already index head-major attention channels.
    wp = params["w_proj"].astype(jnp.bfloat16)            # [C, C]
    bproj = params["b_proj"].reshape(C, 1).astype(jnp.float32)
    gnw = params["gn_w"].reshape(C, 1).astype(jnp.float32)
    gnb = params["gn_b"].reshape(C, 1).astype(jnp.float32)

    # Explicit scoped-VMEM budget (stay within v7x's 64 MiB physical VMEM).
    itemsize = jnp.dtype(x.dtype).itemsize
    bf16, f32 = 2, 4
    ch_pad = max(ch, 16)                                  # bf16 sublane padding per head slab
    est = (2 * 2 * C * Tp * itemsize                      # x in + out blocks, double-buffered
           + 2 * (4 * C * C * bf16 + 8 * C * f32)         # weights/biases, double-buffered
           + 4 * n_heads * ch_pad * Tp * bf16             # q/k/v/att scratches
           + 4 * C * Tp * f32                             # xn + qkv value temporaries
           + 2 * tq * Tp * f32                            # scores + probs tile
           + 2 * C * tq * f32)                            # per-tile attn-out / proj temps
    vmem_limit = int(min(64 * 1024 * 1024, max(32 * 1024 * 1024, 2 * est)))

    kernel = functools.partial(_attention_block_kernel,
                               n_heads=n_heads, n_groups=n_groups, eps=eps,
                               t_valid=T, tq=tq)

    out3 = pl.pallas_call(
        kernel,
        out_shape=jax.ShapeDtypeStruct((B, C, Tp), x.dtype),
        grid_spec=pltpu.PrefetchScalarGridSpec(
            num_scalar_prefetch=0,
            grid=(B,),
            in_specs=[
                pl.BlockSpec((1, C, Tp), lambda b: (b, 0, 0)),   # x (padded)
                pl.BlockSpec((C, 1), lambda b: (0, 0)),          # gn weight
                pl.BlockSpec((C, 1), lambda b: (0, 0)),          # gn bias
                pl.BlockSpec((3 * C, C), lambda b: (0, 0)),      # fused Wqkv (bf16)
                pl.BlockSpec((3 * C, 1), lambda b: (0, 0)),      # fused bqkv (f32)
                pl.BlockSpec((C, C), lambda b: (0, 0)),          # Wproj (bf16)
                pl.BlockSpec((C, 1), lambda b: (0, 0)),          # bproj
            ],
            out_specs=pl.BlockSpec((1, C, Tp), lambda b: (b, 0, 0)),
            scratch_shapes=[
                pltpu.VMEM((n_heads, ch, Tp), jnp.bfloat16),     # q per head
                pltpu.VMEM((n_heads, ch, Tp), jnp.bfloat16),     # k per head
                pltpu.VMEM((n_heads, ch, Tp), jnp.bfloat16),     # v per head
                pltpu.VMEM((n_heads, ch, Tp), jnp.bfloat16),     # attention output per head
            ],
        ),
        compiler_params=pltpu.CompilerParams(
            dimension_semantics=("parallel",),
            vmem_limit_bytes=vmem_limit),
    )(x3, gnw, gnb, wqkv, bqkv, wp, bproj)

    out3 = out3[:, :, :T]
    return out3.reshape(B, C, W, Hs)


# ----------------------- pure-JAX reference (for check) -------------------- #
def attention_block_ref(x, params, *, n_heads, n_groups, eps=1e-5):
    B, C, W, Hs = x.shape
    T = W * Hs
    x3 = x.reshape(B, C, T).astype(jnp.float32)

    # GroupNorm
    xg = x3.reshape(B, n_groups, C // n_groups * T)
    mu = xg.mean(axis=-1, keepdims=True)
    var = ((xg - mu) ** 2).mean(axis=-1, keepdims=True)
    xn = ((xg - mu) / jnp.sqrt(var + eps)).reshape(B, C, T)
    xn = xn * params["gn_w"][None, :, None] + params["gn_b"][None, :, None]

    qkv = jnp.einsum("oc,bct->bot", params["w_qkv"], xn) + params["b_qkv"][None, :, None]

    ch = C // n_heads
    scale = 1.0 / math.sqrt(math.sqrt(ch))
    qkv_h = qkv.reshape(B * n_heads, 3 * ch, T)
    q, k, v = qkv_h[:, :ch], qkv_h[:, ch:2 * ch], qkv_h[:, 2 * ch:]
    w = jnp.einsum("bct,bcs->bts", q * scale, k * scale)
    w = jax.nn.softmax(w, axis=-1)
    a = jnp.einsum("bts,bcs->bct", w, v).reshape(B, C, T)

    h_proj = jnp.einsum("oc,bct->bot", params["w_proj"], a) + params["b_proj"][None, :, None]
    return (x3 + h_proj).reshape(B, C, W, Hs)


# --------------------------------- main ------------------------------------ #
if __name__ == "__main__":
    # Small shapes consistent with the module: B=2, C=32, n_heads=2 (ch=16),
    # n_groups=4, spatial 8x8 -> T=64 tokens (padded to 128 lanes in-wrapper).
    B, C, W, Hs = 2, 32, 8, 8
    n_heads, n_groups = 2, 4

    key = jax.random.PRNGKey(0)
    kx, kw1, kb1, kw2, kb2 = jax.random.split(key, 5)

    x = jax.random.normal(kx, (B, C, W, Hs), dtype=jnp.float32)

    # Faithful parameter init:
    #  - GroupNorm: weight=1, bias=0 (nn.GroupNorm default)
    #  - qkv Conv1d: random weights/bias
    #  - proj_out Conv1d: zero_module -> all zeros
    params = {
        "gn_w": jnp.ones((C,), jnp.float32),
        "gn_b": jnp.zeros((C,), jnp.float32),
        "w_qkv": 0.1 * jax.random.normal(kw1, (3 * C, C), dtype=jnp.float32),
        "b_qkv": 0.1 * jax.random.normal(kb1, (3 * C,), dtype=jnp.float32),
        "w_proj": jnp.zeros((C, C), jnp.float32),
        "b_proj": jnp.zeros((C,), jnp.float32),
    }

    # Verification pass with a NON-zero proj so the whole pipeline
    # (norm -> qkv -> attention -> proj -> residual) is actually exercised.
    # Tolerances relaxed vs an all-f32 version: matmuls run in bf16 on the MXU
    # (f32 accumulation) and the softmax denominator uses an approx reciprocal.
    params_chk = dict(params)
    params_chk["w_proj"] = 0.1 * jax.random.normal(kw2, (C, C), dtype=jnp.float32)
    params_chk["b_proj"] = 0.1 * jax.random.normal(kb2, (C,), dtype=jnp.float32)

    out_chk = attention_block(x, params_chk, n_heads=n_heads, n_groups=n_groups)
    out_chk = jax.block_until_ready(out_chk)
    ref_chk = attention_block_ref(x, params_chk, n_heads=n_heads, n_groups=n_groups)
    np.testing.assert_allclose(np.asarray(out_chk), np.asarray(ref_chk),
                               rtol=2e-2, atol=2e-2)

    # Faithful run (proj_out zero-initialized, as in the PyTorch module).
    out = attention_block(x, params, n_heads=n_heads, n_groups=n_groups)
    out = jax.block_until_ready(out)
    ref = attention_block_ref(x, params, n_heads=n_heads, n_groups=n_groups)
    np.testing.assert_allclose(np.asarray(out), np.asarray(ref),
                               rtol=2e-2, atol=2e-2)
    assert out.shape == (B, C, W, Hs)

    print("KERNEL_OK")
</pallas_src>

<mosaic_0001>
module attributes {stable_mosaic.version = 11 : i64} {
  func.func @_attention_block_kernel(%arg0: i32, %arg1: memref<1x32x128xf32, #tpu.memory_space<vmem>>, %arg2: memref<32x1xf32, #tpu.memory_space<vmem>>, %arg3: memref<32x1xf32, #tpu.memory_space<vmem>>, %arg4: memref<96x32xbf16, #tpu.memory_space<vmem>>, %arg5: memref<96x1xf32, #tpu.memory_space<vmem>>, %arg6: memref<32x32xbf16, #tpu.memory_space<vmem>>, %arg7: memref<32x1xf32, #tpu.memory_space<vmem>>, %arg8: memref<1x32x128xf32, #tpu.memory_space<vmem>>, %arg9: memref<2x16x128xbf16, #tpu.memory_space<vmem>>, %arg10: memref<2x16x128xbf16, #tpu.memory_space<vmem>>, %arg11: memref<2x16x128xbf16, #tpu.memory_space<vmem>>, %arg12: memref<2x16x128xbf16, #tpu.memory_space<vmem>>) attributes {dimension_semantics = [#tpu.dimension_semantics<parallel>], iteration_bounds = array<i64: 2>, scalar_prefetch = 0 : i64, scratch_operands = 4 : i64, tpu.core_type = #tpu.core_type<tc>, window_params = [{transform_indices = @transform_0, window_bounds = array<i64: 1, 32, 128>}, {pipeline_mode = #tpu.pipeline_mode<synchronous>, transform_indices = @transform_1, window_bounds = array<i64: 32, 1>}, {pipeline_mode = #tpu.pipeline_mode<synchronous>, transform_indices = @transform_2, window_bounds = array<i64: 32, 1>}, {pipeline_mode = #tpu.pipeline_mode<synchronous>, transform_indices = @transform_3, window_bounds = array<i64: 96, 32>}, {pipeline_mode = #tpu.pipeline_mode<synchronous>, transform_indices = @transform_4, window_bounds = array<i64: 96, 1>}, {pipeline_mode = #tpu.pipeline_mode<synchronous>, transform_indices = @transform_5, window_bounds = array<i64: 32, 32>}, {pipeline_mode = #tpu.pipeline_mode<synchronous>, transform_indices = @transform_6, window_bounds = array<i64: 32, 1>}, {transform_indices = @transform_7, window_bounds = array<i64: 1, 32, 128>}]} {
    %c0 = arith.constant 0 : index
    %c0_0 = arith.constant 0 : index
    %c0_1 = arith.constant 0 : index
    %0 = vector.load %arg1[%c0, %c0_0, %c0_1] : memref<1x32x128xf32, #tpu.memory_space<vmem>>, vector<1x32x128xf32>
    %1 = vector.shape_cast %0 : vector<1x32x128xf32> to vector<32x128xf32>
    %cst = arith.constant dense<0.000000e+00> : vector<32xf32>
    %2 = vector.multi_reduction <add>, %1, %cst [1] : vector<32x128xf32> to vector<32xf32>
    %3 = vector.shape_cast %2 : vector<32xf32> to vector<32x1xf32>
    %4 = arith.mulf %1, %1 : vector<32x128xf32>
    %cst_2 = arith.constant dense<0.000000e+00> : vector<32xf32>
    %5 = vector.multi_reduction <add>, %4, %cst_2 [1] : vector<32x128xf32> to vector<32xf32>
    %6 = vector.shape_cast %5 : vector<32xf32> to vector<32x1xf32>
    %7 = vector.extract_strided_slice %3 {offsets = [0, 0], sizes = [8, 1], strides = [1, 1]} : vector<32x1xf32> to vector<8x1xf32>
    %8 = vector.shape_cast %7 : vector<8x1xf32> to vector<1x8x1xf32>
    %cst_3 = arith.constant dense<0.000000e+00> : vector<1xf32>
    %9 = vector.multi_reduction <add>, %8, %cst_3 [1, 2] : vector<1x8x1xf32> to vector<1xf32>
    %10 = vector.shape_cast %9 : vector<1xf32> to vector<1x1x1xf32>
    %11 = vector.extract %10[0, 0, 0] : f32 from vector<1x1x1xf32>
    %12 = vector.extract_strided_slice %6 {offsets = [0, 0], sizes = [8, 1], strides = [1, 1]} : vector<32x1xf32> to vector<8x1xf32>
    %13 = vector.shape_cast %12 : vector<8x1xf32> to vector<1x8x1xf32>
    %cst_4 = arith.constant dense<0.000000e+00> : vector<1xf32>
    %14 = vector.multi_reduction <add>, %13, %cst_4 [1, 2] : vector<1x8x1xf32> to vector<1xf32>
    %15 = vector.shape_cast %14 : vector<1xf32> to vector<1x1x1xf32>
    %16 = vector.extract %15[0, 0, 0] : f32 from vector<1x1x1xf32>
    %cst_5 = arith.constant 0.001953125 : f32
    %17 = arith.mulf %11, %cst_5 : f32
    %cst_6 = arith.constant 0.001953125 : f32
    %18 = arith.mulf %16, %cst_6 : f32
    %19 = arith.mulf %17, %17 : f32
    %20 = arith.subf %18, %19 : f32
    %cst_7 = arith.constant 9.99999974E-6 : f32
    %21 = arith.addf %20, %cst_7 : f32
    %22 = math.rsqrt %21 : f32
    %cst_8 = arith.constant 1.000000e+00 : f32
    %23 = vector.broadcast %cst_8 : f32 to vector<8x1xf32>
    %24 = vector.broadcast %17 : f32 to vector<8x1xf32>
    %25 = arith.mulf %24, %23 : vector<8x1xf32>
    %26 = vector.broadcast %22 : f32 to vector<8x1xf32>
    %27 = arith.mulf %26, %23 : vector<8x1xf32>
    %28 = vector.extract_strided_slice %3 {offsets = [8, 0], sizes = [8, 1], strides = [1, 1]} : vector<32x1xf32> to vector<8x1xf32>
    %29 = vector.shape_cast %28 : vector<8x1xf32> to vector<1x8x1xf32>
    %cst_9 = arith.constant dense<0.000000e+00> : vector<1xf32>
    %30 = vector.multi_reduction <add>, %29, %cst_9 [1, 2] : vector<1x8x1xf32> to vector<1xf32>
    %31 = vector.shape_cast %30 : vector<1xf32> to vector<1x1x1xf32>
    %32 = vector.extract %31[0, 0, 0] : f32 from vector<1x1x1xf32>
    %33 = vector.extract_strided_slice %6 {offsets = [8, 0], sizes = [8, 1], strides = [1, 1]} : vector<32x1xf32> to vector<8x1xf32>
    %34 = vector.shape_cast %33 : vector<8x1xf32> to vector<1x8x1xf32>
    %cst_10 = arith.constant dense<0.000000e+00> : vector<1xf32>
    %35 = vector.multi_reduction <add>, %34, %cst_10 [1, 2] : vector<1x8x1xf32> to vector<1xf32>
    %36 = vector.shape_cast %35 : vector<1xf32> to vector<1x1x1xf32>
    %37 = vector.extract %36[0, 0, 0] : f32 from vector<1x1x1xf32>
    %cst_11 = arith.constant 0.001953125 : f32
    %38 = arith.mulf %32, %cst_11 : f32
    %cst_12 = arith.constant 0.001953125 : f32
    %39 = arith.mulf %37, %cst_12 : f32
    %40 = arith.mulf %38, %38 : f32
    %41 = arith.subf %39, %40 : f32
    %cst_13 = arith.constant 9.99999974E-6 : f32
    %42 = arith.addf %41, %cst_13 : f32
    %43 = math.rsqrt %42 : f32
    %cst_14 = arith.constant 1.000000e+00 : f32
    %44 = vector.broadcast %cst_14 : f32 to vector<8x1xf32>
    %45 = vector.broadcast %38 : f32 to vector<8x1xf32>
    %46 = arith.mulf %45, %44 : vector<8x1xf32>
    %47 = vector.broadcast %43 : f32 to vector<8x1xf32>
    %48 = arith.mulf %47, %44 : vector<8x1xf32>
    %49 = vector.extract_strided_slice %3 {offsets = [16, 0], sizes = [8, 1], strides = [1, 1]} : vector<32x1xf32> to vector<8x1xf32>
    %50 = vector.shape_cast %49 : vector<8x1xf32> to vector<1x8x1xf32>
    %cst_15 = arith.constant dense<0.000000e+00> : vector<1xf32>
    %51 = vector.multi_reduction <add>, %50, %cst_15 [1, 2] : vector<1x8x1xf32> to vector<1xf32>
    %52 = vector.shape_cast %51 : vector<1xf32> to vector<1x1x1xf32>
    %53 = vector.extract %52[0, 0, 0] : f32 from vector<1x1x1xf32>
    %54 = vector.extract_strided_slice %6 {offsets = [16, 0], sizes = [8, 1], strides = [1, 1]} : vector<32x1xf32> to vector<8x1xf32>
    %55 = vector.shape_cast %54 : vector<8x1xf32> to vector<1x8x1xf32>
    %cst_16 = arith.constant dense<0.000000e+00> : vector<1xf32>
    %56 = vector.multi_reduction <add>, %55, %cst_16 [1, 2] : vector<1x8x1xf32> to vector<1xf32>
    %57 = vector.shape_cast %56 : vector<1xf32> to vector<1x1x1xf32>
    %58 = vector.extract %57[0, 0, 0] : f32 from vector<1x1x1xf32>
    %cst_17 = arith.constant 0.001953125 : f32
    %59 = arith.mulf %53, %cst_17 : f32
    %cst_18 = arith.constant 0.001953125 : f32
    %60 = arith.mulf %58, %cst_18 : f32
    %61 = arith.mulf %59, %59 : f32
    %62 = arith.subf %60, %61 : f32
    %cst_19 = arith.constant 9.99999974E-6 : f32
    %63 = arith.addf %62, %cst_19 : f32
    %64 = math.rsqrt %63 : f32
    %cst_20 = arith.constant 1.000000e+00 : f32
    %65 = vector.broadcast %cst_20 : f32 to vector<8x1xf32>
    %66 = vector.broadcast %59 : f32 to vector<8x1xf32>
    %67 = arith.mulf %66, %65 : vector<8x1xf32>
    %68 = vector.broadcast %64 : f32 to vector<8x1xf32>
    %69 = arith.mulf %68, %65 : vector<8x1xf32>
    %70 = vector.extract_strided_slice %3 {offsets = [24, 0], sizes = [8, 1], strides = [1, 1]} : vector<32x1xf32> to vector<8x1xf32>
    %71 = vector.shape_cast %70 : vector<8x1xf32> to vector<1x8x1xf32>
    %cst_21 = arith.constant dense<0.000000e+00> : vector<1xf32>
    %72 = vector.multi_reduction <add>, %71, %cst_21 [1, 2] : vector<1x8x1xf32> to vector<1xf32>
    %73 = vector.shape_cast %72 : vector<1xf32> to vector<1x1x1xf32>
    %74 = vector.extract %73[0, 0, 0] : f32 from vector<1x1x1xf32>
    %75 = vector.extract_strided_slice %6 {offsets = [24, 0], sizes = [8, 1], strides = [1, 1]} : vector<32x1xf32> to vector<8x1xf32>
    %76 = vector.shape_cast %75 : vector<8x1xf32> to vector<1x8x1xf32>
    %cst_22 = arith.constant dense<0.000000e+00> : vector<1xf32>
    %77 = vector.multi_reduction <add>, %76, %cst_22 [1, 2] : vector<1x8x1xf32> to vector<1xf32>
    %78 = vector.shape_cast %77 : vector<1xf32> to vector<1x1x1xf32>
    %79 = vector.extract %78[0, 0, 0] : f32 from vector<1x1x1xf32>
    %cst_23 = arith.constant 0.001953125 : f32
    %80 = arith.mulf %74, %cst_23 : f32
    %cst_24 = arith.constant 0.001953125 : f32
    %81 = arith.mulf %79, %cst_24 : f32
    %82 = arith.mulf %80, %80 : f32
    %83 = arith.subf %81, %82 : f32
    %cst_25 = arith.constant 9.99999974E-6 : f32
    %84 = arith.addf %83, %cst_25 : f32
    %85 = math.rsqrt %84 : f32
    %cst_26 = arith.constant 1.000000e+00 : f32
    %86 = vector.broadcast %cst_26 : f32 to vector<8x1xf32>
    %87 = vector.broadcast %80 : f32 to vector<8x1xf32>
    %88 = arith.mulf %87, %86 : vector<8x1xf32>
    %89 = vector.broadcast %85 : f32 to vector<8x1xf32>
    %90 = arith.mulf %89, %86 : vector<8x1xf32>
    %91 = tpu.concatenate %25, %46, %67, %88 in 0 : vector<8x1xf32>, vector<8x1xf32>, vector<8x1xf32>, vector<8x1xf32> -> vector<32x1xf32>
    %92 = tpu.concatenate %27, %48, %69, %90 in 0 : vector<8x1xf32>, vector<8x1xf32>, vector<8x1xf32>, vector<8x1xf32> -> vector<32x1xf32>
    %93 = vector.broadcast %91 : vector<32x1xf32> to vector<32x128xf32>
    %94 = arith.subf %1, %93 : vector<32x128xf32>
    %c0_27 = arith.constant 0 : index
    %c0_28 = arith.constant 0 : index
    %95 = vector.load %arg2[%c0_27, %c0_28] : memref<32x1xf32, #tpu.memory_space<vmem>>, vector<32x1xf32>
    %96 = arith.mulf %92, %95 : vector<32x1xf32>
    %97 = vector.broadcast %96 : vector<32x1xf32> to vector<32x128xf32>
    %98 = arith.mulf %94, %97 : vector<32x128xf32>
    %c0_29 = arith.constant 0 : index
    %c0_30 = arith.constant 0 : index
    %99 = vector.load %arg3[%c0_29, %c0_30] : memref<32x1xf32, #tpu.memory_space<vmem>>, vector<32x1xf32>
    %100 = vector.broadcast %99 : vector<32x1xf32> to vector<32x128xf32>
    %101 = arith.addf %98, %100 : vector<32x128xf32>
    %102 = arith.truncf %101 : vector<32x128xf32> to vector<32x128xbf16>
    %c0_31 = arith.constant 0 : index
    %c0_32 = arith.constant 0 : index
    %103 = vector.load %arg4[%c0_31, %c0_32] : memref<96x32xbf16, #tpu.memory_space<vmem>>, vector<96x32xbf16>
    %cst_33 = arith.constant dense<0.000000e+00> : vector<96x128xf32>
    %104 = tpu.matmul %103, %102, %cst_33 {dimension_numbers = #tpu.dot_dimension_numbers<[1], [0], [0], [1], [0, 0, 1, 1], [], []>} : vector<96x32xbf16>, vector<32x128xbf16>, vector<96x128xf32> -> vector<96x128xf32>
    %c0_34 = arith.constant 0 : index
    %c0_35 = arith.constant 0 : index
    %105 = vector.load %arg5[%c0_34, %c0_35] : memref<96x1xf32, #tpu.memory_space<vmem>>, vector<96x1xf32>
    %106 = vector.broadcast %105 : vector<96x1xf32> to vector<96x128xf32>
    %107 = arith.addf %104, %106 : vector<96x128xf32>
    %108 = vector.extract_strided_slice %107 {offsets = [0, 0], sizes = [32, 128], strides = [1, 1]} : vector<96x128xf32> to vector<32x128xf32>
    %109 = vector.shape_cast %108 : vector<32x128xf32> to vector<2x16x128xf32>
    %110 = arith.truncf %109 : vector<2x16x128xf32> to vector<2x16x128xbf16>
    %c0_36 = arith.constant 0 : index
    %c0_37 = arith.constant 0 : index
    %c0_38 = arith.constant 0 : index
    %111 = vector.load %arg9[%c0_36, %c0_37, %c0_38] : memref<2x16x128xbf16, #tpu.memory_space<vmem>>, vector<2x16x128xbf16>
    tpu.vector_store %arg9[%c0_36, %c0_37, %c0_38], %110 {strides = array<i32>} : memref<2x16x128xbf16, #tpu.memory_space<vmem>>, vector<2x16x128xbf16>,
    %112 = vector.extract_strided_slice %107 {offsets = [32, 0], sizes = [32, 128], strides = [1, 1]} : vector<96x128xf32> to vector<32x128xf32>
    %113 = vector.shape_cast %112 : vector<32x128xf32> to vector<2x16x128xf32>
    %114 = arith.truncf %113 : vector<2x16x128xf32> to vector<2x16x128xbf16>
    %c0_39 = arith.constant 0 : index
    %c0_40 = arith.constant 0 : index
    %c0_41 = arith.constant 0 : index
    %115 = vector.load %arg10[%c0_39, %c0_40, %c0_41] : memref<2x16x128xbf16, #tpu.memory_space<vmem>>, vector<2x16x128xbf16>
    tpu.vector_store %arg10[%c0_39, %c0_40, %c0_41], %114 {strides = array<i32>} : memref<2x16x128xbf16, #tpu.memory_space<vmem>>, vector<2x16x128xbf16>,
    %116 = vector.extract_strided_slice %107 {offsets = [64, 0], sizes = [32, 128], strides = [1, 1]} : vector<96x128xf32> to vector<32x128xf32>
    %117 = vector.shape_cast %116 : vector<32x128xf32> to vector<2x16x128xf32>
    %118 = arith.truncf %117 : vector<2x16x128xf32> to vector<2x16x128xbf16>
    %c0_42 = arith.constant 0 : index
    %c0_43 = arith.constant 0 : index
    %c0_44 = arith.constant 0 : index
    %119 = vector.load %arg11[%c0_42, %c0_43, %c0_44] : memref<2x16x128xbf16, #tpu.memory_space<vmem>>, vector<2x16x128xbf16>
    tpu.vector_store %arg11[%c0_42, %c0_43, %c0_44], %118 {strides = array<i32>} : memref<2x16x128xbf16, #tpu.memory_space<vmem>>, vector<2x16x128xbf16>,
    %c0_i32 = arith.constant 0 : i32
    %c2_i32 = arith.constant 2 : i32
    %120 = arith.addi %c0_i32, %c2_i32 : i32
    %c1_i32 = arith.constant 1 : i32
    scf.for %arg13 = %c0_i32 to %120 step %c1_i32  : i32 {
      %134 = arith.index_cast %arg13 : i32 to index
      %c0_60 = arith.constant 0 : index
      %c0_61 = arith.constant 0 : index
      %135 = vector.load %arg10[%134, %c0_60, %c0_61] : memref<2x16x128xbf16, #tpu.memory_space<vmem>>, vector<1x16x128xbf16>
      %136 = vector.shape_cast %135 : vector<1x16x128xbf16> to vector<16x128xbf16>
      %137 = arith.index_cast %arg13 : i32 to index
      %c0_62 = arith.constant 0 : index
      %c0_63 = arith.constant 0 : index
      %138 = vector.load %arg11[%137, %c0_62, %c0_63] : memref<2x16x128xbf16, #tpu.memory_space<vmem>>, vector<1x16x128xbf16>
      %139 = vector.shape_cast %138 : vector<1x16x128xbf16> to vector<16x128xbf16>
      %c0_i32_64 = arith.constant 0 : i32
      %c128_i32 = arith.constant 128 : i32
      %140 = arith.muli %c0_i32_64, %c128_i32 : i32
      %141 = tpu.assume_multiple %140, 128 : i32
      %142 = arith.index_cast %arg13 : i32 to index
      %c0_65 = arith.constant 0 : index
      %143 = arith.index_cast %141 : i32 to index
      %144 = vector.load %arg9[%142, %c0_65, %143] : memref<2x16x128xbf16, #tpu.memory_space<vmem>>, vector<1x16x128xbf16>
      %145 = vector.shape_cast %144 : vector<1x16x128xbf16> to vector<16x128xbf16>
      %cst_66 = arith.constant dense<0.000000e+00> : vector<128x128xf32>
      %146 = tpu.matmul %145, %136, %cst_66 {dimension_numbers = #tpu.dot_dimension_numbers<[0], [0], [1], [1], [0, 1, 1, 1], [], []>} : vector<16x128xbf16>, vector<16x128xbf16>, vector<128x128xf32> -> vector<128x128xf32>
      %147 = tpu.iota {dimensions = array<i32: 1>} : vector<128x128xi32>
      %c64_i32 = arith.constant 64 : i32
      %148 = vector.broadcast %c64_i32 : i32 to vector<128x128xi32>
      %149 = arith.cmpi slt, %147, %148 : vector<128x128xi32>
      %cst_67 = arith.constant -1.000000e+30 : f32
      %150 = vector.broadcast %cst_67 : f32 to vector<128x128xf32>
      %151 = arith.select %149, %146, %150 : vector<128x128xi1>, vector<128x128xf32>
      %cst_68 = arith.constant dense<0xFF800000> : vector<128xf32>
      %152 = vector.multi_reduction <maximumf>, %151, %cst_68 [1] : vector<128x128xf32> to vector<128xf32>
      %153 = vector.shape_cast %152 : vector<128xf32> to vector<128x1xf32>
      %154 = vector.broadcast %153 : vector<128x1xf32> to vector<128x128xf32>
      %155 = arith.subf %151, %154 : vector<128x128xf32>
      %156 = math.exp %155 : vector<128x128xf32>
      %cst_69 = arith.constant dense<0.000000e+00> : vector<128xf32>
      %157 = vector.multi_reduction <add>, %156, %cst_69 [1] : vector<128x128xf32> to vector<128xf32>
      %158 = vector.shape_cast %157 : vector<128xf32> to vector<128x1xf32>
      %159 = tpu.reciprocal %158 {approx = true} : vector<128x1xf32> -> vector<128x1xf32>
      %160 = vector.broadcast %159 : vector<128x1xf32> to vector<128x128xf32>
      %161 = arith.mulf %156, %160 : vector<128x128xf32>
      %162 = arith.truncf %161 : vector<128x128xf32> to vector<128x128xbf16>
      %cst_70 = arith.constant dense<0.000000e+00> : vector<16x128xf32>
      %163 = tpu.matmul %139, %162, %cst_70 {dimension_numbers = #tpu.dot_dimension_numbers<[1], [1], [0], [0], [0, 0, 1, 0], [], []>} : vector<16x128xbf16>, vector<128x128xbf16>, vector<16x128xf32> -> vector<16x128xf32>
      %164 = arith.truncf %163 : vector<16x128xf32> to vector<16x128xbf16>
      %165 = arith.index_cast %arg13 : i32 to index
      %c0_71 = arith.constant 0 : index
      %166 = arith.index_cast %141 : i32 to index
      %167 = vector.load %arg12[%165, %c0_71, %166] : memref<2x16x128xbf16, #tpu.memory_space<vmem>>, vector<1x16x128xbf16>
      %168 = vector.shape_cast %167 : vector<1x16x128xbf16> to vector<16x128xbf16>
      %169 = vector.shape_cast %164 : vector<16x128xbf16> to vector<1x16x128xbf16>
      tpu.vector_store %arg12[%165, %c0_71, %166], %169 {strides = array<i32>} : memref<2x16x128xbf16, #tpu.memory_space<vmem>>, vector<1x16x128xbf16>,
      %c1_i32_72 = arith.constant 1 : i32
    }
    %c2_i32_45 = arith.constant 2 : i32
    %c0_46 = arith.constant 0 : index
    %c0_47 = arith.constant 0 : index
    %c0_48 = arith.constant 0 : index
    %121 = vector.load %arg12[%c0_46, %c0_47, %c0_48] : memref<2x16x128xbf16, #tpu.memory_space<vmem>>, vector<2x16x128xbf16>
    %122 = vector.shape_cast %121 : vector<2x16x128xbf16> to vector<32x128xbf16>
    %c0_49 = arith.constant 0 : index
    %c0_50 = arith.constant 0 : index
    %123 = vector.load %arg6[%c0_49, %c0_50] : memref<32x32xbf16, #tpu.memory_space<vmem>>, vector<32x32xbf16>
    %cst_51 = arith.constant dense<0.000000e+00> : vector<32x128xf32>
    %124 = tpu.matmul %123, %122, %cst_51 {dimension_numbers = #tpu.dot_dimension_numbers<[1], [0], [0], [1], [0, 0, 1, 1], [], []>} : vector<32x32xbf16>, vector<32x128xbf16>, vector<32x128xf32> -> vector<32x128xf32>
    %c0_52 = arith.constant 0 : index
    %c0_53 = arith.constant 0 : index
    %c0_54 = arith.constant 0 : index
    %125 = vector.load %arg1[%c0_52, %c0_53, %c0_54] : memref<1x32x128xf32, #tpu.memory_space<vmem>>, vector<1x32x128xf32>
    %126 = vector.shape_cast %125 : vector<1x32x128xf32> to vector<32x128xf32>
    %127 = arith.addf %126, %124 : vector<32x128xf32>
    %c0_55 = arith.constant 0 : index
    %c0_56 = arith.constant 0 : index
    %128 = vector.load %arg7[%c0_55, %c0_56] : memref<32x1xf32, #tpu.memory_space<vmem>>, vector<32x1xf32>
    %129 = vector.broadcast %128 : vector<32x1xf32> to vector<32x128xf32>
    %130 = arith.addf %127, %129 : vector<32x128xf32>
    %c0_57 = arith.constant 0 : index
    %c0_58 = arith.constant 0 : index
    %c0_59 = arith.constant 0 : index
    %131 = vector.load %arg8[%c0_57, %c0_58, %c0_59] : memref<1x32x128xf32, #tpu.memory_space<vmem>>, vector<1x32x128xf32>
    %132 = vector.shape_cast %131 : vector<1x32x128xf32> to vector<32x128xf32>
    %133 = vector.shape_cast %130 : vector<32x128xf32> to vector<1x32x128xf32>
    tpu.vector_store %arg8[%c0_57, %c0_58, %c0_59], %133 {strides = array<i32>} : memref<1x32x128xf32, #tpu.memory_space<vmem>>, vector<1x32x128xf32>,
    return
  }
  func.func @transform_0(%arg0: i32) -> (i32, i32, i32) {
    %c0_i32 = arith.constant 0 : i32
    %c0_i32_0 = arith.constant 0 : i32
    %c0_i32_1 = arith.constant 0 : i32
    return %arg0, %c0_i32, %c0_i32_0 : i32, i32, i32
  }
  func.func @transform_1(%arg0: i32) -> (i32, i32) {
    %c0_i32 = arith.constant 0 : i32
    %c0_i32_0 = arith.constant 0 : i32
    %c0_i32_1 = arith.constant 0 : i32
    return %c0_i32, %c0_i32_0 : i32, i32
  }
  func.func @transform_2(%arg0: i32) -> (i32, i32) {
    %c0_i32 = arith.constant 0 : i32
    %c0_i32_0 = arith.constant 0 : i32
    %c0_i32_1 = arith.constant 0 : i32
    return %c0_i32, %c0_i32_0 : i32, i32
  }
  func.func @transform_3(%arg0: i32) -> (i32, i32) {
    %c0_i32 = arith.constant 0 : i32
    %c0_i32_0 = arith.constant 0 : i32
    %c0_i32_1 = arith.constant 0 : i32
    return %c0_i32, %c0_i32_0 : i32, i32
  }
  func.func @transform_4(%arg0: i32) -> (i32, i32) {
    %c0_i32 = arith.constant 0 : i32
    %c0_i32_0 = arith.constant 0 : i32
    %c0_i32_1 = arith.constant 0 : i32
    return %c0_i32, %c0_i32_0 : i32, i32
  }
  func.func @transform_5(%arg0: i32) -> (i32, i32) {
    %c0_i32 = arith.constant 0 : i32
    %c0_i32_0 = arith.constant 0 : i32
    %c0_i32_1 = arith.constant 0 : i32
    return %c0_i32, %c0_i32_0 : i32, i32
  }
  func.func @transform_6(%arg0: i32) -> (i32, i32) {
    %c0_i32 = arith.constant 0 : i32
    %c0_i32_0 = arith.constant 0 : i32
    %c0_i32_1 = arith.constant 0 : i32
    return %c0_i32, %c0_i32_0 : i32, i32
  }
  func.func @transform_7(%arg0: i32) -> (i32, i32, i32) {
    %c0_i32 = arith.constant 0 : i32
    %c0_i32_0 = arith.constant 0 : i32
    %c0_i32_1 = arith.constant 0 : i32
    return %arg0, %c0_i32, %c0_i32_0 : i32, i32, i32
  }
}

</mosaic_0001>

<bundles_post_ra>
// kernel: tpu_custom_call.1
= control target key start
LH: loop header
LB: loop body
LE: loop exit
PB: predicated region body
PF: predicated region fallthrough
CT: control target
= control target key end

     0   :  { %12 = vsyncpa [#allocation7], 0  ;;  %s2125_s0 = inlined_call_operand.vmem [shape: f32[2,32,128], index: 0, kind: input, shape index: {}]   ;;  %s2126_s1 = inlined_call_operand.vmem [shape: f32[32,1], index: 1, kind: input, shape index: {}]   ;;  %s2127_s2 = inlined_call_operand.vmem [shape: f32[32,1], index: 2, kind: input, shape index: {}]   ;;  %s2128_s3 = inlined_call_operand.vmem [shape: bf16[96,32], index: 3, kind: input, shape index: {}]   ;;  %s2129_s4 = inlined_call_operand.vmem [shape: f32[96,1], index: 4, kind: input, shape index: {}]   ;;  %s2130_s5 = inlined_call_operand.vmem [shape: bf16[32,32], index: 5, kind: input, shape index: {}]   ;;  %s2131_s6 = inlined_call_operand.vmem [shape: f32[32,1], index: 6, kind: input, shape index: {}]   ;;  %s2132_s7 = inlined_call_operand.hbm [shape: f32[2,32,128], index: 7, kind: output, shape index: {}]  }
   0x1   :  { %14 = vsyncpa [#allocation7 + $0x1], 0  ;;  %s1722_s24 = smov 0   ;;  %s1724_s25 = smov 0  }
   0x2   :  { %s1726_s26 = smov 0   ;;  %s1728_s27 = smov 0  }
   0x3 LB: > { %s1743_s28 = sadd.s32 4294967295, %s1670_s27   ;;  %s1305_s29 = sadd.s32 4294967294, %s1670_s27   ;;  %s1670_s27 = sphi %s1728_s27, %s2140_s27   ;;  %s1666_s26 = sphi %s1726_s26, %s2139_s26   ;;  %s1662_s25 = sphi %s1724_s25, %s2138_s25   ;;  %s1658_s24 = sphi %s1722_s24, %s2137_s24  }
   0x4   : > { %s1747_s30 = sadd.s32 1, %s1670_s27   ;;  %s179_s8 = sadd.s32 1, %s1666_s26 }
   0x5   : > { %s176_s9 = ssub.s32 %s1670_s27, %s1747_s30  ;;  %p189_p0 = scmp.ne.s32.totalorder %s1666_s26, %s1662_s25 }
   0x6   : > { %p177_p1 = scmp.eq.s32.totalorder %s176_s9, 0  ;;  %p190_p2 = scmp.eq.s32.totalorder %s1743_s28, 1 }
   0x7   : > { %p195_p3 = scmp.ne.s32.totalorder %s1662_s25, %s1658_s24  ;;  %p196_p4 = scmp.eq.s32.totalorder %s1305_s29, 1 }
   0x8   : > { %s1758_s10 = scalar_select %p177_p1, %s1666_s26, %s179_s8  }
   0x9   : > { %p1760_p5 = por %p190_p2, %p189_p0  ;;  %p1764_p6 = por %p196_p4, %p195_p3 }
   0xa   : > { %p1308_p7 = scmp.ge.s32.totalorder %s1670_s27, 1  ;;  %p240_p8 = scmp.lt.s32.totalorder %s1670_s27, 3 }
   0xc   : > { %p241_p9 = pnand %p1308_p7, %p240_p8 }
   0xd   : > { %p272_p10 = scmp.lt.s32.totalorder (!%p241_p9), %s1743_s28, 1  ;;  %vm302_vm0 = vcmask (!%p241_p9), 7168   ;;  %s2133_s18 = sand.u32 (!%p241_p9), 1, %s1662_s25   ;;  %v1676_v16 = vmov (!%p241_p9), 0   ;;  %v479_v41 = vld [vmem:[%s2127_s2] sm:$0xff] (!%p241_p9)  ;;  %v480_v42 = vld [vmem:[%s2127_s2 + $0x8] sm:$0xff] (!%p241_p9) }
   0xe   : > { %244 = sbr.rel (%p241_p9) target bundleno = 2203 (0x89b), region = 48  ;;  %s1808_s19 = sshll.u32 (!%p241_p9), %s2133_s18, 5  ;;  %1521 = vset.pattern.permute.xlu0 (!%p241_p9), %v1676_v16  ;;  %1520 = vset.pattern.permute.xlu1 (!%p241_p9), %v1676_v16  ;;  %v447_v59 = vld [vmem:[%s2126_s1] sm:$0xff] (!%p241_p9)  ;;  %vm623_vm1 = vcmask (!%p241_p9), 261120  }
   0xf   : > { %s1907_s18 = smov (!%p241_p9), 0  }
  0x15   : > { %s273_s13 = scalar_select %p272_p10, %s1743_s28, 1 }
  0x17   : > { %s1345_s14 = sshll.u32 %s273_s13, 5 }
  0x18   : > { %s1775_s17 = scalar_lea.vmem %s2125_s0, %s1345_s14 }
  0x19   : > { %v1778_v0 = vld [vmem:[%s1775_s17] sm:$0xff]  ;;  %v1781_v1 = vld [vmem:[%s1775_s17 + $0x8] sm:$0xff]  ;;  %v1791_v6 = vld [vmem:[%s1775_s17 + $0x10] sm:$0xff] }
  0x1a   : > { %282 = vadd.xlane.f32.xlu0 %v1778_v0  ;;  %v290_v2 = vmul.f32 %v1778_v0, %v1778_v0  ;;  %284 = vadd.xlane.f32.xlu1 %v1781_v1  ;;  %v291_v3 = vmul.f32 %v1781_v1, %v1781_v1  ;;  %v292_v10 = vmul.f32 %v1791_v6, %v1791_v6  ;;  %v1799_v13 = vld [vmem:[%s1775_s17 + $0x18] sm:$0xff] }
  0x1b   : > { %v293_v15 = vmul.f32 %v1799_v13, %v1799_v13 }
  0x1e   : > { %294 = vadd.xlane.f32.xlu0 %v290_v2  ;;  %296 = vadd.xlane.f32.xlu1 %v291_v3 }
  0xa7   : > { %v283_v4 = vpop.xlane.xlu0 %282  ;;  %v285_v8 = vpop.xlane.xlu1 %284 }
  0xa8   : > { %v303_v5 = vsel %vm302_vm0, %v283_v4, 0.0  ;;  %v333_v11 = vsel %vm302_vm0, %v285_v8, 0.0 }
  0xa9   : > { %304 = vadd.xlane.f32.xlu0 %v303_v5 }
  0xab   : > { %v295_v7 = vpop.xlane.xlu0 %294  ;;  %v297_v12 = vpop.xlane.xlu1 %296 }
  0xac   : > { %v313_v9 = vsel %vm302_vm0, %v295_v7, 0.0  ;;  %v343_v14 = vsel %vm302_vm0, %v297_v12, 0.0 }
  0xad   : > { %286 = vadd.xlane.f32.xlu0 %v1791_v6  ;;  %314 = vadd.xlane.f32.xlu1 %v313_v9 }
  0xb1   : > { %298 = vadd.xlane.f32.xlu1 %v292_v10  ;;  %334 = vadd.xlane.f32.xlu0 %v333_v11 }
  0xb5   : > { %288 = vadd.xlane.f32.xlu0 %v1799_v13  ;;  %344 = vadd.xlane.f32.xlu1 %v343_v14 }
  0xb9   : > { %300 = vadd.xlane.f32.xlu1 %v293_v15 }
 0x136   : > { %v305_v17 = vpop.xlane.xlu0 %304 }
 0x137   : > { %v306_v18 = vrot.slane %v305_v17, 4 }
 0x139   : > { %v307_v19 = vadd.f32 %v306_v18, %v305_v17 }
 0x13a   : > { %v315_v20 = vpop.xlane.xlu1 %314  ;;  %v287_v21 = vpop.xlane.xlu0 %286 }
 0x13b   : > { %v308_v22 = vrot.slane %v307_v19, 2  ;;  %v316_v23 = vrot.slane %v315_v20, 4  ;;  %v363_v24 = vsel %vm302_vm0, %v287_v21, 0.0 }
 0x13c   : > { %364 = vadd.xlane.f32.xlu0 %v363_v24 }
 0x13d   : > { %v317_v25 = vadd.f32 %v316_v23, %v315_v20  ;;  %v309_v26 = vadd.f32 %v308_v22, %v307_v19  ;;  %v448_v19 = vld [vmem:[%s2126_s1 + $0x8] sm:$0xff] }
 0x13e   : > { %v299_v27 = vpop.xlane.xlu1 %298  ;;  %v335_v28 = vpop.xlane.xlu0 %334 }
 0x13f   : > { %v318_v29 = vrot.slane %v317_v25, 2  ;;  %v373_v30 = vsel %vm302_vm0, %v299_v27, 0.0  ;;  %v310_v31 = vrot.slane %v309_v26, 1  ;;  %v336_v43 = vrot.slane %v335_v28, 4 }
 0x140   : > { %374 = vadd.xlane.f32.xlu1 %v373_v30 }
 0x141   : > { %v311_v32 = vadd.f32 %v310_v31, %v309_v26  ;;  %v319_v33 = vadd.f32 %v318_v29, %v317_v25  ;;  %v337_v46 = vadd.f32 %v336_v43, %v335_v28 }
 0x142   : > { %v289_v34 = vpop.xlane.xlu0 %288  ;;  %v345_v35 = vpop.xlane.xlu1 %344 }
 0x143   : > { %1443 = vpush %v311_v32  ;;  %v320_v36 = vrot.slane %v319_v33, 1  ;;  %v393_v37 = vsel %vm302_vm0, %v289_v34, 0.0  ;;  %v346_v45 = vrot.slane %v345_v35, 4  ;;  %v338_v48 = vrot.slane %v337_v46, 2 }
 0x144   : > { %394 = vadd.xlane.f32.xlu0 %v393_v37 }
 0x145   : > { %v321_v38 = vadd.f32 %v320_v36, %v319_v33  ;;  %v347_v47 = vadd.f32 %v346_v45, %v345_v35  ;;  %v339_v51 = vadd.f32 %v338_v48, %v337_v46  ;;  %v521_v45 = vld [vmem:[%s2129_s4] sm:$0xff]  ;;  %v523_v46 = vld [vmem:[%s2129_s4 + $0x10] sm:$0xff] }
 0x146   : > { %v301_v39 = vpop.xlane.xlu1 %300  ;;  %v525_v48 = vld [vmem:[%s2129_s4 + $0x20] sm:$0xff] }
 0x147   : > { %1445 = vpush %v321_v38  ;;  %v403_v40 = vsel %vm302_vm0, %v301_v39, 0.0  ;;  %v348_v50 = vrot.slane %v347_v47, 2  ;;  %v340_v53 = vrot.slane %v339_v51, 1 }
 0x148   : > { %404 = vadd.xlane.f32.xlu1 %v403_v40  ;;  %v449_v40 = vld [vmem:[%s2126_s1 + $0x10] sm:$0xff] }
 0x149   : > { %v349_v52 = vadd.f32 %v348_v50, %v347_v47  ;;  %v341_v56 = vadd.f32 %v340_v53, %v339_v51  ;;  %v529_v50 = vld [vmem:[%s2129_s4 + $0x40] sm:$0xff] }
 0x14b   : > { %v350_v54 = vrot.slane %v349_v52, 1 }
 0x14d   : > { %v351_v57 = vadd.f32 %v350_v54, %v349_v52  ;;  %v531_v52 = vld [vmem:[%s2129_s4 + $0x50] sm:$0xff] }
 0x159   : > { %485 = vperm.xlu1 %1520, %v479_v41  }
 0x15d   : > { %490 = vperm.xlu1 %1520, %v480_v42  }
 0x174   : > { %s1444_s29 = spop %1443 }
 0x175   : > { %s323_s8 = smul.f32 0.001953125, %s1444_s29 }
 0x177   : > { %v331_v44 = vstv %s323_s8  ;;  %s325_s9 = smul.f32 %s323_s8, %s323_s8 }
 0x178   : > { %s1446_s13 = spop %1445  ;;  %425 = vperm.xlu0 %1521, %v331_v44   ;;  %v481_v44 = vld [vmem:[%s2127_s2 + $0x10] sm:$0xff] }
 0x179   : > { %s324_s14 = smul.f32 0.001953125, %s1446_s13 }
 0x17b   : > { %s326_s15 = ssub.f32 %s324_s14, %s325_s9 }
 0x17d   : > { %s327_s16 = sadd.f32 1e-05, %s326_s15 }
 0x17f   : > { %v328_v49 = vstv %s327_s16 }
 0x180   : > { %1528 = vrsqrt.f32 %v328_v49  ;;  %v527_v49 = vld [vmem:[%s2129_s4 + $0x30] sm:$0xff] }
 0x18a   : > { %v1529_v55 = vpop.eup %1528 }
 0x18b   : > { %1447 = vpush %v1529_v55 }
 0x18c   : > { %1449 = vpush %v341_v56 }
 0x18d   : > { %1451 = vpush %v351_v57 }
 0x1bc   : > { %s1448_s20 = spop %1447 }
 0x1bd   : > { %s1450_s21 = spop %1449  ;;  %v332_v58 = vstv %s1448_s20 }
 0x1be   : > { %s353_s22 = smul.f32 0.001953125, %s1450_s21  ;;  %s1452_s23 = spop %1451  ;;  %v451_v61 = vmul.f32 %v447_v59, %v332_v58 }
 0x1bf   : > { %s354_s29 = smul.f32 0.001953125, %s1452_s23 }
 0x1c0   : > { %s355_s13 = smul.f32 %s353_s22, %s353_s22  ;;  %v361_v60 = vstv %s353_s22 }
 0x1c1   : > { %430 = vperm.xlu1 %1520, %v361_v60  }
 0x1c2   : > { %s356_s14 = ssub.f32 %s354_s29, %s355_s13 }
 0x1c4   : > { %s357_s15 = sadd.f32 1e-05, %s356_s14 }
 0x1c5   : > { %457 = vperm.xlu1 %1520, %v451_v61  }
 0x1c6   : > { %v358_v62 = vstv %s357_s15 }
 0x1c7   : > { %1530 = vrsqrt.f32 %v358_v62 }
 0x1c9   : > { %v365_v63 = vpop.xlane.xlu0 %364 }
 0x1ca   : > { %v366_v2 = vrot.slane %v365_v63, 4 }
 0x1cc   : > { %v367_v3 = vadd.f32 %v366_v2, %v365_v63 }
 0x1cd   : > { %v375_v4 = vpop.xlane.xlu1 %374 }
 0x1ce   : > { %v368_v5 = vrot.slane %v367_v3, 2  ;;  %v376_v7 = vrot.slane %v375_v4, 4 }
 0x1d0   : > { %v377_v8 = vadd.f32 %v376_v7, %v375_v4  ;;  %v369_v9 = vadd.f32 %v368_v5, %v367_v3  ;;  %v450_v3 = vld [vmem:[%s2126_s1 + $0x18] sm:$0xff] }
 0x1d1   : > { %v1531_v10 = vpop.eup %1530  ;;  %v395_v23 = vpop.xlane.xlu0 %394  ;;  %v524_v7 = vld [vmem:[%s2129_s4 + $0x18] sm:$0xff] }
 0x1d2   : > { %v378_v11 = vrot.slane %v377_v8, 2  ;;  %1453 = vpush %v1531_v10  ;;  %v370_v12 = vrot.slane %v369_v9, 1  ;;  %v396_v24 = vrot.slane %v395_v23, 4  ;;  %v526_v10 = vld [vmem:[%s2129_s4 + $0x28] sm:$0xff] }
 0x1d4   : > { %v371_v14 = vadd.f32 %v370_v12, %v369_v9  ;;  %v379_v15 = vadd.f32 %v378_v11, %v377_v8  ;;  %v397_v27 = vadd.f32 %v396_v24, %v395_v23  ;;  %v1522_v8 = vld [vmem:[%s2128_s3] sm:$0xff]   ;;  %v1523_v9 = vld [vmem:[%s2128_s3 + $0x10] sm:$0xff]   ;;  %v528_v11 = vld [vmem:[%s2129_s4 + $0x38] sm:$0xff] }
 0x1d5   : > { %v405_v22 = vpop.xlane.xlu1 %404  ;;  %1381 = vmatprep.mubr.msk.bf16.mxu0 %vm623_vm1, %v1522_v8  ;;  %1385 = vmatprep.mubr.msk.bf16.mxu1 %vm623_vm1, %v1523_v9  ;;  %v530_v12 = vld [vmem:[%s2129_s4 + $0x48] sm:$0xff] }
 0x1d6   : > { %1455 = vpush %v371_v14  ;;  %v380_v17 = vrot.slane %v379_v15, 1  ;;  %v406_v26 = vrot.slane %v405_v22, 4  ;;  %v398_v29 = vrot.slane %v397_v27, 2  ;;  %v532_v14 = vld [vmem:[%s2129_s4 + $0x58] sm:$0xff] }
 0x1d8   : > { %v381_v18 = vadd.f32 %v380_v17, %v379_v15  ;;  %v407_v28 = vadd.f32 %v406_v26, %v405_v22  ;;  %v399_v32 = vadd.f32 %v398_v29, %v397_v27  ;;  %v1524_v29 = vld [vmem:[%s2128_s3 + $0x8] sm:$0xff]  }
 0x1d9   : > { %v486_v51 = vpop.permute.xlu1 %485 }
 0x1da   : > { %1457 = vpush %v381_v18  ;;  %v408_v31 = vrot.slane %v407_v28, 2  ;;  %v400_v34 = vrot.slane %v399_v32, 1 }
 0x1dc   : > { %v409_v33 = vadd.f32 %v408_v31, %v407_v28  ;;  %v401_v37 = vadd.f32 %v400_v34, %v399_v32 }
 0x1dd   : > { %v491_v53 = vpop.permute.xlu1 %490 }
 0x1de   : > { %v410_v35 = vrot.slane %v409_v33, 1 }
 0x1e0   : > { %v411_v38 = vadd.f32 %v410_v35, %v409_v33 }
 0x1f7   : > { %v426_v55 = vpop.permute.xlu0 %425 }
 0x1f8   : > { %v443_v57 = vsub.f32 %v1778_v0, %v426_v55  ;;  %v482_v0 = vld [vmem:[%s2127_s2 + $0x18] sm:$0xff] }
 0x203   : > { %s1454_s21 = spop %1453 }
 0x204   : > { %v362_v20 = vstv %s1454_s21 }
 0x205   : > { %v452_v21 = vmul.f32 %v448_v19, %v362_v20 }
 0x207   : > { %462 = vperm.xlu1 %1520, %v452_v21   ;;  %s1456_s22 = spop %1455 }
 0x208   : > { %s383_s23 = smul.f32 0.001953125, %s1456_s22 }
 0x20a   : > { %v391_v25 = vstv %s383_s23  ;;  %s385_s29 = smul.f32 %s383_s23, %s383_s23 }
 0x20b   : > { %435 = vperm.xlu1 %1520, %v391_v25   ;;  %s1458_s8 = spop %1457 }
 0x20c   : > { %s384_s9 = smul.f32 0.001953125, %s1458_s8 }
 0x20e   : > { %s386_s13 = ssub.f32 %s384_s9, %s385_s29 }
 0x210   : > { %s387_s14 = sadd.f32 1e-05, %s386_s13 }
 0x212   : > { %v388_v30 = vstv %s387_s14 }
 0x213   : > { %1532 = vrsqrt.f32 %v388_v30  ;;  %v1525_v30 = vld [vmem:[%s2128_s3 + $0x18] sm:$0xff]  }
 0x21d   : > { %v1533_v36 = vpop.eup %1532 }
 0x21e   : > { %1459 = vpush %v1533_v36 }
 0x21f   : > { %1461 = vpush %v401_v37 }
 0x220   : > { %1463 = vpush %v411_v38 }
 0x240   : > { %v431_v54 = vpop.permute.xlu1 %430 }
 0x241   : > { %v444_v58 = vsub.f32 %v1781_v1, %v431_v54  ;;  %v522_v1 = vld [vmem:[%s2129_s4 + $0x8] sm:$0xff] }
 0x244   : > { %v458_v56 = vpop.permute.xlu1 %457 }
 0x245   : > { %v475_v59 = vmul.f32 %v458_v56, %v443_v57 }
 0x247   : > { %v503_v62 = vadd.f32 %v486_v51, %v475_v59 }
 0x24f   : > { %s1460_s15 = spop %1459 }
 0x250   : > { %s1462_s16 = spop %1461  ;;  %v392_v39 = vstv %s1460_s15 }
 0x251   : > { %s413_s20 = smul.f32 0.001953125, %s1462_s16  ;;  %s1464_s21 = spop %1463  ;;  %v453_v42 = vmul.f32 %v449_v40, %v392_v39 }
 0x252   : > { %s414_s22 = smul.f32 0.001953125, %s1464_s21 }
 0x253   : > { %s415_s8 = smul.f32 %s413_s20, %s413_s20  ;;  %v421_v41 = vstv %s413_s20 }
 0x254   : > { %440 = vperm.xlu1 %1520, %v421_v41  }
 0x255   : > { %s416_s9 = ssub.f32 %s414_s22, %s415_s8  ;;  %s1905_s22 = scalar_lea.vmem [#allocation6], %s1808_s19 }
 0x257   : > { %s417_s13 = sadd.f32 1e-05, %s416_s9 }
 0x258   : > { %467 = vperm.xlu1 %1520, %v453_v42  }
 0x259   : > { %v418_v43 = vstv %s417_s13 }
 0x25a   : > { %1534 = vrsqrt.f32 %v418_v43 }
 0x25c   : > { %495 = vperm.xlu1 %1520, %v481_v44  }
 0x260   : > { %535 = vperm.xlu1 %1520, %v521_v45  }
 0x264   : > { %v1535_v47 = vpop.eup %1534  ;;  %545 = vperm.xlu1 %1520, %v523_v46  }
 0x265   : > { %1465 = vpush %v1535_v47 }
 0x268   : > { %555 = vperm.xlu1 %1520, %v525_v48  }
 0x26c   : > { %565 = vperm.xlu1 %1520, %v527_v49  }
 0x270   : > { %575 = vperm.xlu1 %1520, %v529_v50  }
 0x274   : > { %585 = vperm.xlu1 %1520, %v531_v52  }
 0x286   : > { %v463_v60 = vpop.permute.xlu1 %462 }
 0x287   : > { %v476_v61 = vmul.f32 %v463_v60, %v444_v58 }
 0x289   : > { %v504_v63 = vadd.f32 %v491_v53, %v476_v61 }
 0x28a   : > { %v436_v15 = vpop.permute.xlu1 %435 }
 0x28b   : > { %v507_v2 = vpack.c.bf16 %v504_v63, %v503_v62  ;;  %v445_v20 = vsub.f32 %v1791_v6, %v436_v15  ;;  %v1526_v6 = vld [vmem:[%s2128_s3 + $0x20] sm:$0xff]  }
 0x28d   : > { %1377 = vmatprep.subr.bf16.mxu0 %v507_v2  ;;  %1439 = vmatprep.subr.bf16.mxu1 %v507_v2 }
 0x28e   : > { %1378 = vmatpush3.bf16.msra.mxu0 %v507_v2  ;;  %1441 = vmatpush3.bf16.msra.mxu1 %v507_v2 }
 0x296   : > { %s1466_s21 = spop %1465 }
 0x297   : > { %v422_v4 = vstv %s1466_s21 }
 0x298   : > { %v454_v5 = vmul.f32 %v450_v3, %v422_v4 }
 0x29a   : > { %472 = vperm.xlu0 %1521, %v454_v5  }
 0x29e   : > { %500 = vperm.xlu0 %1521, %v482_v0  }
 0x2a2   : > { %540 = vperm.xlu0 %1521, %v522_v1  }
 0x2a6   : > { %550 = vperm.xlu0 %1521, %v524_v7  }
 0x2aa   : > { %560 = vperm.xlu0 %1521, %v526_v10  }
 0x2ae   : > { %570 = vperm.xlu0 %1521, %v528_v11  }
 0x2b2   : > { %580 = vperm.xlu0 %1521, %v530_v12  }
 0x2b6   : > { %590 = vperm.xlu0 %1521, %v532_v14  }
 0x2d3   : > { %v441_v17 = vpop.permute.xlu1 %440 }
 0x2d4   : > { %v446_v21 = vsub.f32 %v1799_v13, %v441_v17  ;;  %v1527_v13 = vld [vmem:[%s2128_s3 + $0x28] sm:$0xff]  }
 0x2d7   : > { %v468_v18 = vpop.permute.xlu1 %467 }
 0x2d8   : > { %v477_v23 = vmul.f32 %v468_v18, %v445_v20 }
 0x2db   : > { %v496_v22 = vpop.permute.xlu1 %495 }
 0x2dc   : > { %v505_v26 = vadd.f32 %v496_v22, %v477_v23 }
 0x2df   : > { %v536_v31 = vpop.permute.xlu1 %535 }
 0x2e3   : > { %v546_v33 = vpop.permute.xlu1 %545 }
 0x2e7   : > { %v556_v35 = vpop.permute.xlu1 %555 }
 0x2eb   : > { %v566_v37 = vpop.permute.xlu1 %565 }
 0x2ef   : > { %v576_v39 = vpop.permute.xlu1 %575 }
 0x2f3   : > { %v586_v62 = vpop.permute.xlu1 %585 }
 0x319   : > { %v473_v19 = vpop.permute.xlu0 %472 }
 0x31a   : > { %v478_v24 = vmul.f32 %v473_v19, %v446_v21 }
 0x31d   : > { %v501_v25 = vpop.permute.xlu0 %500 }
 0x31e   : > { %v506_v27 = vadd.f32 %v501_v25, %v478_v24 }
 0x320   : > { %v508_v28 = vpack.c.bf16 %v506_v27, %v505_v26 }
 0x321   : > { %v541_v32 = vpop.permute.xlu0 %540 }
 0x322   : > { %1379 = vmatprep.subr.bf16.mxu0 %v508_v28  ;;  %1440 = vmatprep.subr.bf16.mxu1 %v508_v28 }
 0x323   : > { %1380 = vmatpush3.bf16.msra.mxu0 %v508_v28  ;;  %1442 = vmatpush3.bf16.msra.mxu1 %v508_v28 }
 0x325   : > { %v551_v34 = vpop.permute.xlu0 %550 }
 0x326   : > { %1382 = vmatmul.mubr.msk.bf16.vlgmr.msra.gmra.mrb[0].mxu0 %vm623_vm1, %v1524_v29  ;;  %1386 = vmatmul.mubr.msk.bf16.vlgmr.msra.gmra.mrb[0].mxu1 %vm623_vm1, %v1525_v30 }
 0x327   : > { %1389 = vmatprep.mubr.msk.bf16.mxu1 %vm623_vm1, %v1526_v6 }
 0x329   : > { %v561_v36 = vpop.permute.xlu0 %560 }
 0x32d   : > { %v571_v38 = vpop.permute.xlu0 %570 }
 0x32e   : > { %1390 = vmatmul.mubr.msk.bf16.gmra.mrb[4].mxu1 %vm623_vm1, %v1527_v13 }
 0x331   : > { %v581_v52 = vpop.permute.xlu0 %580 }
 0x335   : > { %v591_v2 = vpop.permute.xlu0 %590 }
 0x3f9   : > { %v1383_v40 = vpop.f32.mrb[0].mxu0  ;;  %v1387_v41 = vpop.f32.mrb[0].mxu1 }
 0x3fa   : > { %v676_v42 = vpop.f32.mrb[1].mxu0  ;;  %v692_v43 = vpop.f32.mrb[1].mxu1  ;;  %v685_v46 = vadd.f32 %v1383_v40, %v546_v33  ;;  %v701_v47 = vadd.f32 %v1387_v41, %v566_v37 }
 0x3fb   : > { %v1384_v44 = vpop.f32.mrb[2].mxu0  ;;  %v1388_v45 = vpop.f32.mrb[2].mxu1  ;;  %v677_v53 = vadd.f32 %v676_v42, %v536_v31  ;;  %v693_v54 = vadd.f32 %v692_v43, %v556_v35 }
 0x3fc   : > { %v688_v48 = vadd.f32 %v1384_v44, %v551_v34  ;;  %v704_v49 = vadd.f32 %v1388_v45, %v571_v38  ;;  %v679_v50 = vpop.f32.mrb[3].mxu0  ;;  %v695_v51 = vpop.f32.mrb[3].mxu1 }
 0x3fd   : > { %v680_v55 = vadd.f32 %v679_v50, %v541_v32  ;;  %v696_v56 = vadd.f32 %v695_v51, %v561_v36 }
 0x3fe   : > { %v724_v57 = vpack.c.bf16 %v688_v48, %v685_v46  ;;  %v728_v58 = vpack.c.bf16 %v704_v49, %v701_v47 }
 0x3ff   : > { %v723_v59 = vpack.c.bf16 %v680_v55, %v677_v53  ;;  %v727_v60 = vpack.c.bf16 %v696_v56, %v693_v54 }
 0x400   : > { %726 = vst [vmem:[#allocation2 + $0x8] sm:$0xff] %v724_v57  ;;  %730 = vst [vmem:[#allocation3 + $0x8] sm:$0xff] %v728_v58 }
 0x401   : > { %725 = vst [vmem:[#allocation2] sm:$0xff] %v723_v59  ;;  %729 = vst [vmem:[#allocation3] sm:$0xff] %v727_v60  ;;  %v1391_v61 = vpop.f32.mrb[4].mxu1 }
 0x402   : > { %v708_v63 = vpop.f32.mrb[5].mxu1  ;;  %v717_v4 = vadd.f32 %v1391_v61, %v586_v62 }
 0x403   : > { %v1392_v3 = vpop.f32.mrb[6].mxu1  ;;  %v709_v1 = vadd.f32 %v708_v63, %v576_v39 }
 0x404   : > { %v720_v5 = vadd.f32 %v1392_v3, %v591_v2  ;;  %v711_v0 = vpop.f32.mrb[7].mxu1 }
 0x405   : > { %v712_v7 = vadd.f32 %v711_v0, %v581_v52 }
 0x406   : > { %v732_v8 = vpack.c.bf16 %v720_v5, %v717_v4 }
 0x407   : > { %v731_v9 = vpack.c.bf16 %v712_v7, %v709_v1 }
 0x408   : > { %734 = vst [vmem:[#allocation4 + $0x8] sm:$0xff] %v732_v8 }
 0x409   : > { %733 = vst [vmem:[#allocation4] sm:$0xff] %v731_v9 }
 0x40a LB: >> { %s1913_s29 = sshll.u32 %s1674_s18, 3  ;;  %vm767_vm2 = vcmask 130048   ;;  %v889_v22 = vlaneseq  ;;  %vm1678_vm4 = vmmov 0   ;;  %s740_s18 = sadd.s32 1, %s1674_s18   ;;  %s1674_s18 = sphi %s1907_s18, %s740_s18  }
 0x40b   : >> { %s749_s8 = scalar_lea.vmem [#allocation2], %s1913_s29  ;;  %s742_s9 = scalar_lea.vmem [#allocation3], %s1913_s29 }
 0x40c   : >> { %v750_v10 = vld [vmem:[%s749_s8] sm:$0xff]  ;;  %v890_v23 = vand.u32 127, %v889_v22  ;;  %s745_s19 = scalar_lea.vmem [#allocation4], %s1913_s29  ;;  %s1103_s13 = scalar_lea.vmem [#allocation5], %s1913_s29 }
 0x40d   : >> { %v743_v11 = vld [vmem:[%s742_s9] sm:$0xff]  ;;  %751 = vxpose.xlu0.c.b16.start.end [1/1] (short) %v750_v10, 128  ;;  %p737_p11 = scmp.ge.s32.totalorder %s740_s18, 2  }
 0x40e   : >> { %1393 = vmatprep.subr.bf16.mxu0 %v743_v11  ;;  %vm891_vm3 = vcmp.lt.s32.totalorder %v890_v23, 64  ;;  %1601 = vset.pattern.permute.xlu1 (%p737_p11), %v1676_v16  ;;  %s1346_s14 = sshll.u32 (%p737_p11), %s1743_s28, 9  ;;  %s1230_s16 = sshll.u32 (%p737_p11), %s1905_s22, 4  ;;  %s2077_s16 = int_to_ptr.vmem [resolvable:$true] %s1230_s16 }
 0x40f   : >> { %1394 = vmatpush3.bf16.msra.mxu0 %v743_v11  ;;  %s2075_s21 = scalar_lea.hbm (%p737_p11), %s2132_s7, %s1346_s14  ;;  %s2136_s28 = sand.u32 (%p737_p11), 1, %s1662_s25  }
 0x410   : > { %s2084_s23 = scalar_lea.sflag (%p737_p11), [#allocation7], %s2136_s28  ;;  %s1604_s20 = scalar_lea.vmem (%p737_p11), %s2077_s16, 512 }
 0x411   : > { %p1605_p12 = scmp.ne.s32.totalorder (%p737_p11), %s2077_s16, %s1604_s20  ;;  %s1679_s18 = smov (%p737_p11), [#allocation6]  }
 0x412   : > { %s1608_s29 = sshll.u32 (%p737_p11), %s1679_s18, 4  ;;  %s1609_s29 = int_to_ptr.vmem [resolvable:$false] %s1608_s29 }
 0x413   : > { %p1606_p13 = pnand (%p737_p11), %p1605_p12, %p1760_p5  ;;  %s1610_s8 = scalar_lea.vmem (%p737_p11), %s1609_s29, 1024 }
 0x414   : > { %p1611_p1 = scmp.lt.s32.totalorder (%p737_p11), %s2077_s16, %s1609_s29  ;;  %p1612_p2 = scmp.lt.s32.totalorder (%p737_p11), %s1610_s8, %s1604_s20 }
 0x415   : > { %p1607_p0 = pneg (%p737_p11), %p1606_p13 }
 0x416   : > { %1600 = vset.pattern.permute.xlu0 (%p737_p11), %v1676_v16  ;;  %v1184_v16 = vld [vmem:[%s2131_s6] sm:$0xff] (%p737_p11)  ;;  %p1613_p3 = por (%p737_p11), %p1612_p2, %p1611_p1 }
 0x418   : > { %p1614_p4 = pnand (%p737_p11), %p1613_p3, %p1607_p0 }
 0x473   : >> { %v759_v12 = vpop.trf.xlu0 }
 0x474   : >> { %1395 = vmatprep.mubr.msk.bf16.mxu0 %vm767_vm2, %v759_v12 }
 0x477   : >> { %v760_v14 = vpop.trf.xlu0 }
 0x478   : >> { %1396 = vmatmul.mubr.msk.bf16.vlgmr.msra.gmra.mrb[0].mxu0 %vm767_vm2, %v760_v14 }
 0x47b   : >> { %v761_v15 = vpop.trf.xlu0 }
 0x47c   : >> { %1399 = vmatprep.mubr.msk.bf16.mxu0 %vm767_vm2, %v761_v15 }
 0x47f   : >> { %v762_v17 = vpop.trf.xlu0 }
 0x480   : >> { %1400 = vmatmul.mubr.msk.bf16.gmra.mrb[4].mxu0 %vm767_vm2, %v762_v17 }
 0x483   : >> { %v763_v18 = vpop.trf.xlu0 }
 0x484   : >> { %1403 = vmatprep.mubr.msk.bf16.mxu0 %vm767_vm2, %v763_v18 }
 0x487   : >> { %v764_v19 = vpop.trf.xlu0 }
 0x488   : >> { %1404 = vmatmul.mubr.msk.bf16.gmra.mrb[8].mxu0 %vm767_vm2, %v764_v19 }
 0x48b   : >> { %v765_v20 = vpop.trf.xlu0 }
 0x48c   : >> { %1407 = vmatprep.mubr.msk.bf16.mxu0 %vm767_vm2, %v765_v20 }
 0x48f   : >> { %v766_v21 = vpop.trf.xlu0 }
 0x490   : >> { %1408 = vmatmul.mubr.msk.bf16.gmra.mrb[12].mxu0 %vm767_vm2, %v766_v21 }
 0x54b   : >> { %v1397_v24 = vpop.f32.mrb[0].mxu0 }
 0x54c   : >> { %v826_v25 = vpop.f32.mrb[1].mxu0  ;;  %v894_v30 = vsel %vm891_vm3, %v1397_v24, -1e+30 }
 0x54d   : >> { %v1398_v26 = vpop.f32.mrb[2].mxu0  ;;  %v892_v27 = vsel %vm891_vm3, %v826_v25, -1e+30 }
 0x54e   : >> { %908 = vmax.xlane.f32.xlu0 %v892_v27  ;;  %v829_v28 = vpop.f32.mrb[3].mxu0  ;;  %v895_v33 = vsel %vm891_vm3, %v1398_v26, -1e+30 }
 0x54f   : >> { %v893_v29 = vsel %vm891_vm3, %v829_v28, -1e+30 }
 0x550   : >> { %910 = vmax.xlane.f32.xlu1 %v893_v29 }
 0x553   : >> { %v1401_v6 = vpop.f32.mrb[4].mxu0 }
 0x554   : >> { %912 = vmax.xlane.f32.xlu1 %v894_v30  ;;  %v842_v13 = vpop.f32.mrb[5].mxu0  ;;  %v898_v41 = vsel %vm891_vm3, %v1401_v6, -1e+30 }
 0x555   : >> { %v1402_v31 = vpop.f32.mrb[6].mxu0  ;;  %v896_v34 = vsel %vm891_vm3, %v842_v13, -1e+30 }
 0x556   : >> { %v845_v32 = vpop.f32.mrb[7].mxu0  ;;  %v899_v45 = vsel %vm891_vm3, %v1402_v31, -1e+30 }
 0x557   : >> { %v897_v39 = vsel %vm891_vm3, %v845_v32, -1e+30 }
 0x558   : >> { %914 = vmax.xlane.f32.xlu1 %v895_v33 }
 0x55b   : >> { %v1405_v35 = vpop.f32.mrb[8].mxu0 }
 0x55c   : >> { %916 = vmax.xlane.f32.xlu1 %v896_v34  ;;  %v858_v36 = vpop.f32.mrb[9].mxu0  ;;  %v1944_v50 = vsel %vm891_vm3, %v1405_v35, -1e+30 }
 0x55d   : >> { %v1406_v37 = vpop.f32.mrb[10].mxu0  ;;  %v900_v47 = vsel %vm891_vm3, %v858_v36, -1e+30 }
 0x55e   : >> { %v861_v38 = vpop.f32.mrb[11].mxu0  ;;  %v1948_v51 = vsel %vm891_vm3, %v1406_v37, -1e+30 }
 0x55f   : >> { %v901_v49 = vsel %vm891_vm3, %v861_v38, -1e+30 }
 0x560   : >> { %918 = vmax.xlane.f32.xlu1 %v897_v39 }
 0x563   : >> { %v1409_v40 = vpop.f32.mrb[12].mxu0 }
 0x564   : >> { %920 = vmax.xlane.f32.xlu1 %v898_v41  ;;  %v874_v42 = vpop.f32.mrb[13].mxu0  ;;  %v1956_v53 = vsel %vm891_vm3, %v1409_v40, -1e+30 }
 0x565   : >> { %v1410_v43 = vpop.f32.mrb[14].mxu0  ;;  %v1952_v52 = vsel %vm891_vm3, %v874_v42, -1e+30 }
 0x566   : >> { %v877_v44 = vpop.f32.mrb[15].mxu0  ;;  %v1939_v48 = vsel %vm891_vm3, %v1410_v43, -1e+30 }
 0x567   : >> { %v1934_v46 = vsel %vm891_vm3, %v877_v44, -1e+30 }
 0x568   : >> { %922 = vmax.xlane.f32.xlu1 %v899_v45  ;;  %934 = vmax.xlane.f32.xlu0 %v1934_v46 }
 0x56c   : >> { %924 = vmax.xlane.f32.xlu1 %v900_v47  ;;  %938 = vmax.xlane.f32.xlu0 %v1939_v48 }
 0x570   : >> { %926 = vmax.xlane.f32.xlu1 %v901_v49 }
 0x574   : >> { %928 = vmax.xlane.f32.xlu1 %v1944_v50 }
 0x578   : >> { %930 = vmax.xlane.f32.xlu1 %v1948_v51 }
 0x57c   : >> { %932 = vmax.xlane.f32.xlu1 %v1952_v52 }
 0x580   : >> { %936 = vmax.xlane.f32.xlu1 %v1956_v53 }
 0x5db   : >> { %v909_v54 = vpop.xlane.xlu0 %908 }
 0x5dc   : >> { %v940_v55 = vsub.f32 %v892_v27, %v909_v54 }
 0x5dd   : >> { %v911_v56 = vpop.xlane.xlu1 %910 }
 0x5de   : >> { %v956_v57 = vmul.f32 1.442695, %v940_v55  ;;  %v941_v58 = vsub.f32 %v893_v29, %v911_v56 }
 0x5e0   : >> { %1536 = vpow2.f32 %v956_v57  ;;  %v958_v59 = vmul.f32 1.442695, %v941_v58 }
 0x5e1   : >> { %v913_v60 = vpop.xlane.xlu1 %912 }
 0x5e2   : >> { %1538 = vpow2.f32 %v958_v59  ;;  %v942_v61 = vsub.f32 %v894_v30, %v913_v60 }
 0x5e4   : >> { %v960_v62 = vmul.f32 1.442695, %v942_v61 }
 0x5e5   : >> { %v915_v63 = vpop.xlane.xlu1 %914 }
 0x5e6   : >> { %1540 = vpow2.f32 %v960_v62  ;;  %v943_v2 = vsub.f32 %v895_v33, %v915_v63 }
 0x5e8   : >> { %v962_v3 = vmul.f32 1.442695, %v943_v2 }
 0x5e9   : >> { %v917_v4 = vpop.xlane.xlu1 %916 }
 0x5ea   : >> { %v1959_v5 = vpop.eup %1536  ;;  %1542 = vpow2.f32 %v962_v3  ;;  %v944_v0 = vsub.f32 %v896_v34, %v917_v4 }
 0x5eb   : >> { %988 = vadd.xlane.f32.xlu1 %v1959_v5 }
 0x5ec   : >> { %v1962_v1 = vpop.eup %1538  ;;  %v964_v7 = vmul.f32 1.442695, %v944_v0 }
 0x5ed   : >> { %v919_v8 = vpop.xlane.xlu1 %918  ;;  %990 = vadd.xlane.f32.xlu0 %v1962_v1 }
 0x5ee   : >> { %1544 = vpow2.f32 %v964_v7  ;;  %v945_v9 = vsub.f32 %v897_v39, %v919_v8  ;;  %v1677_v39 = vmov 0.0  }
 0x5ef   : >> { %1411 = vmatprep.subr.bf16.mxu1 %v1677_v39  ;;  %1427 = vmatprep.mubr.msk.bf16.mxu1 %vm1678_vm4, %v1677_v39 }
 0x5f0   : >> { %v1965_v10 = vpop.eup %1540  ;;  %v966_v11 = vmul.f32 1.442695, %v945_v9 }
 0x5f1   : >> { %v921_v12 = vpop.xlane.xlu1 %920  ;;  %992 = vadd.xlane.f32.xlu1 %v1965_v10 }
 0x5f2   : >> { %1546 = vpow2.f32 %v966_v11  ;;  %v946_v14 = vsub.f32 %v898_v41, %v921_v12 }
 0x5f4   : >> { %v1968_v15 = vpop.eup %1542  ;;  %v968_v17 = vmul.f32 1.442695, %v946_v14 }
 0x5f5   : >> { %v923_v18 = vpop.xlane.xlu1 %922  ;;  %994 = vadd.xlane.f32.xlu0 %v1968_v15  ;;  %v935_v29 = vpop.xlane.xlu0 %934 }
 0x5f6   : >> { %1548 = vpow2.f32 %v968_v17  ;;  %v947_v19 = vsub.f32 %v899_v45, %v923_v18  ;;  %v953_v33 = vsub.f32 %v1934_v46, %v935_v29 }
 0x5f8   : >> { %v1971_v20 = vpop.eup %1544  ;;  %v970_v21 = vmul.f32 1.442695, %v947_v19  ;;  %v982_v40 = vmul.f32 1.442695, %v953_v33 }
 0x5f9   : >> { %v925_v22 = vpop.xlane.xlu1 %924  ;;  %996 = vadd.xlane.f32.xlu1 %v1971_v20  ;;  %v939_v35 = vpop.xlane.xlu0 %938 }
 0x5fa   : >> { %1550 = vpow2.f32 %v970_v21  ;;  %v948_v23 = vsub.f32 %v900_v47, %v925_v22  ;;  %v955_v41 = vsub.f32 %v1939_v48, %v939_v35 }
 0x5fc   : >> { %v1974_v24 = vpop.eup %1546  ;;  %v972_v25 = vmul.f32 1.442695, %v948_v23  ;;  %v986_v46 = vmul.f32 1.442695, %v955_v41 }
 0x5fd   : >> { %v927_v26 = vpop.xlane.xlu1 %926  ;;  %998 = vadd.xlane.f32.xlu0 %v1974_v24 }
 0x5fe   : >> { %1552 = vpow2.f32 %v972_v25  ;;  %v949_v27 = vsub.f32 %v901_v49, %v927_v26 }
 0x600   : >> { %v1977_v28 = vpop.eup %1548  ;;  %v974_v30 = vmul.f32 1.442695, %v949_v27 }
 0x601   : >> { %v929_v6 = vpop.xlane.xlu1 %928  ;;  %1000 = vadd.xlane.f32.xlu1 %v1977_v28 }
 0x602   : >> { %1554 = vpow2.f32 %v974_v30  ;;  %v950_v13 = vsub.f32 %v1944_v50, %v929_v6 }
 0x604   : >> { %v1981_v31 = vpop.eup %1550  ;;  %v976_v32 = vmul.f32 1.442695, %v950_v13 }
 0x605   : >> { %v931_v34 = vpop.xlane.xlu1 %930  ;;  %1002 = vadd.xlane.f32.xlu0 %v1981_v31 }
 0x606   : >> { %1556 = vpow2.f32 %v976_v32  ;;  %v951_v36 = vsub.f32 %v1948_v51, %v931_v34 }
 0x608   : >> { %v1986_v37 = vpop.eup %1552  ;;  %v978_v38 = vmul.f32 1.442695, %v951_v36 }
 0x609   : >> { %1004 = vadd.xlane.f32.xlu1 %v1986_v37  ;;  %v933_v42 = vpop.xlane.xlu1 %932 }
 0x60a   : >> { %1558 = vpow2.f32 %v978_v38  ;;  %v952_v43 = vsub.f32 %v1952_v52, %v933_v42 }
 0x60b   : >> { %1560 = vpow2.f32 %v982_v40 }
 0x60c   : >> { %v1992_v44 = vpop.eup %1554  ;;  %v980_v45 = vmul.f32 1.442695, %v952_v43 }
 0x60d   : >> { %v937_v47 = vpop.xlane.xlu1 %936  ;;  %1006 = vadd.xlane.f32.xlu0 %v1992_v44 }
 0x60e   : >> { %1562 = vpow2.f32 %v980_v45  ;;  %v954_v49 = vsub.f32 %v1956_v53, %v937_v47 }
 0x60f   : >> { %1564 = vpow2.f32 %v986_v46 }
 0x610   : >> { %v1996_v50 = vpop.eup %1556  ;;  %v984_v48 = vmul.f32 1.442695, %v954_v49 }
 0x611   : >> { %1008 = vadd.xlane.f32.xlu1 %v1996_v50 }
 0x612   : >> { %1566 = vpow2.f32 %v984_v48  ;;  %v746_v48 = vld [vmem:[%s745_s19] sm:$0xff] }
 0x614   : >> { %v1999_v51 = vpop.eup %1558 }
 0x615   : >> { %1010 = vadd.xlane.f32.xlu0 %v1999_v51  ;;  %v2002_v52 = vpop.eup %1560 }
 0x618   : >> { %v2004_v54 = vpop.eup %1562 }
 0x619   : >> { %1012 = vadd.xlane.f32.xlu1 %v2004_v54  ;;  %1014 = vadd.xlane.f32.xlu0 %v2002_v52  ;;  %v2008_v53 = vpop.eup %1564 }
 0x61c   : >> { %v2010_v55 = vpop.eup %1566 }
 0x61d   : >> { %1016 = vadd.xlane.f32.xlu1 %v2010_v55  ;;  %1018 = vadd.xlane.f32.xlu0 %v2008_v53 }
 0x633   : > { %1190 = vperm.xlu0 (%p737_p11), %1600, %v1184_v16  }
 0x678   : >> { %v989_v56 = vpop.xlane.xlu1 %988 }
 0x679   : >> { %1568 = vrcp.f32 %v989_v56 }
 0x67a   : >> { %v991_v57 = vpop.xlane.xlu0 %990 }
 0x67b   : >> { %1570 = vrcp.f32 %v991_v57 }
 0x67e   : >> { %v993_v58 = vpop.xlane.xlu1 %992 }
 0x67f   : >> { %1572 = vrcp.f32 %v993_v58  ;;  %v1186_v58 = vld [vmem:[%s2131_s6 + $0x10] sm:$0xff] (%p737_p11) }
 0x680   : > { %1200 = vperm.xlu1 (%p737_p11), %1601, %v1186_v58  }
 0x682   : >> { %v995_v59 = vpop.xlane.xlu0 %994 }
 0x683   : >> { %v1569_v60 = vpop.eup %1568  ;;  %1574 = vrcp.f32 %v995_v59  ;;  %v1603_v59 = vld [vmem:[%s2130_s5 + $0x8] sm:$0xff] (%p737_p11)  }
 0x684   : >> { %v1036_v63 = vmul.f32 %v1569_v60, %v1959_v5  ;;  %v1187_v60 = vld [vmem:[%s2131_s6 + $0x18] sm:$0xff] (%p737_p11) }
 0x685   : >> { %v1571_v61 = vpop.eup %1570  ;;  %1205 = vperm.xlu1 (%p737_p11), %1601, %v1187_v60  }
 0x686   : >> { %v997_v62 = vpop.xlane.xlu1 %996  ;;  %v1037_v2 = vmul.f32 %v1571_v61, %v1962_v1  ;;  %v1185_v61 = vld [vmem:[%s2131_s6 + $0x8] sm:$0xff] (%p737_p11) }
 0x687   : >> { %1576 = vrcp.f32 %v997_v62  ;;  %1195 = vperm.xlu0 (%p737_p11), %1600, %v1185_v61  }
 0x688   : >> { %v1052_v3 = vpack.c.bf16 %v1037_v2, %v1036_v63  ;;  %v1178_v63 = vld [vmem:[%s1775_s17 + $0x10] sm:$0xff] (%p737_p11) }
 0x689   : >> { %v1573_v0 = vpop.eup %1572 }
 0x68a   : >> { %1412 = vmatpush3.bf16.xpose.msra.mxu1 %v1052_v3  ;;  %v999_v4 = vpop.xlane.xlu0 %998  ;;  %v1038_v9 = vmul.f32 %v1573_v0, %v1965_v10  ;;  %v1176_v3 = vld [vmem:[%s1775_s17] sm:$0xff] (%p737_p11)  ;;  %v1179_v0 = vld [vmem:[%s1775_s17 + $0x18] sm:$0xff] (%p737_p11) }
 0x68b   : >> { %1578 = vrcp.f32 %v999_v4  ;;  %1413 = vmatprep.subr.bf16.mxu1 %v1677_v39 }
 0x68d   : >> { %v1575_v7 = vpop.eup %1574 }
 0x68e   : >> { %v1001_v8 = vpop.xlane.xlu1 %1000  ;;  %v1039_v11 = vmul.f32 %v1575_v7, %v1968_v15 }
 0x68f   : >> { %1580 = vrcp.f32 %v1001_v8 }
 0x690   : >> { %v1053_v12 = vpack.c.bf16 %v1039_v11, %v1038_v9  ;;  %v1177_v9 = vld [vmem:[%s1775_s17 + $0x8] sm:$0xff] (%p737_p11) }
 0x691   : >> { %v1577_v14 = vpop.eup %1576 }
 0x692   : >> { %1414 = vmatpush3.bf16.xpose.msra.mxu1 %v1053_v12  ;;  %v1003_v5 = vpop.xlane.xlu0 %1002  ;;  %v1040_v18 = vmul.f32 %v1577_v14, %v1971_v20 }
 0x693   : >> { %1582 = vrcp.f32 %v1003_v5  ;;  %1415 = vmatprep.subr.bf16.mxu1 %v1677_v39 }
 0x695   : >> { %v1579_v1 = vpop.eup %1578 }
 0x696   : >> { %v1005_v17 = vpop.xlane.xlu1 %1004  ;;  %v1041_v19 = vmul.f32 %v1579_v1, %v1974_v24 }
 0x697   : >> { %1584 = vrcp.f32 %v1005_v17 }
 0x698   : >> { %v1054_v21 = vpack.c.bf16 %v1041_v19, %v1040_v18 }
 0x699   : >> { %v1581_v22 = vpop.eup %1580 }
 0x69a   : >> { %1416 = vmatpush3.bf16.xpose.msra.mxu1 %v1054_v21  ;;  %v1007_v10 = vpop.xlane.xlu0 %1006  ;;  %v1042_v25 = vmul.f32 %v1581_v22, %v1977_v28 }
 0x69b   : >> { %1586 = vrcp.f32 %v1007_v10  ;;  %1417 = vmatprep.subr.bf16.mxu1 %v1677_v39 }
 0x69d   : >> { %v1583_v15 = vpop.eup %1582 }
 0x69e   : >> { %v1009_v23 = vpop.xlane.xlu1 %1008  ;;  %v1043_v26 = vmul.f32 %v1583_v15, %v1981_v31 }
 0x69f   : >> { %1588 = vrcp.f32 %v1009_v23 }
 0x6a0   : >> { %v1055_v27 = vpack.c.bf16 %v1043_v26, %v1042_v25 }
 0x6a1   : >> { %v1585_v29 = vpop.eup %1584 }
 0x6a2   : >> { %1418 = vmatpush3.bf16.xpose.msra.mxu1 %v1055_v27  ;;  %v1011_v20 = vpop.xlane.xlu0 %1010  ;;  %v1044_v13 = vmul.f32 %v1585_v29, %v1986_v37 }
 0x6a3   : >> { %1590 = vrcp.f32 %v1011_v20  ;;  %1419 = vmatprep.subr.bf16.mxu1 %v1677_v39 }
 0x6a5   : >> { %v1587_v24 = vpop.eup %1586 }
 0x6a6   : >> { %v1013_v30 = vpop.xlane.xlu1 %1012  ;;  %v1015_v6 = vpop.xlane.xlu0 %1014  ;;  %v1045_v32 = vmul.f32 %v1587_v24, %v1992_v44 }
 0x6a7   : >> { %1592 = vrcp.f32 %v1013_v30 }
 0x6a8   : >> { %1594 = vrcp.f32 %v1015_v6  ;;  %v1056_v28 = vpack.c.bf16 %v1045_v32, %v1044_v13 }
 0x6a9   : >> { %v1589_v31 = vpop.eup %1588 }
 0x6aa   : >> { %1420 = vmatpush3.bf16.xpose.msra.mxu1 %v1056_v28  ;;  %v1017_v33 = vpop.xlane.xlu1 %1016  ;;  %v1019_v34 = vpop.xlane.xlu0 %1018  ;;  %v1046_v36 = vmul.f32 %v1589_v31, %v1996_v50 }
 0x6ab   : >> { %1421 = vmatprep.subr.bf16.mxu1 %v1677_v39  ;;  %1596 = vrcp.f32 %v1017_v33 }
 0x6ac   : >> { %1598 = vrcp.f32 %v1019_v34 }
 0x6ad   : >> { %v1591_v35 = vpop.eup %1590 }
 0x6ae   : >> { %v1047_v38 = vmul.f32 %v1591_v35, %v1999_v51 }
 0x6b0   : >> { %v1057_v40 = vpack.c.bf16 %v1047_v38, %v1046_v36 }
 0x6b1   : >> { %v1593_v37 = vpop.eup %1592 }
 0x6b2   : >> { %v1595_v41 = vpop.eup %1594  ;;  %1422 = vmatpush3.bf16.xpose.msra.mxu1 %v1057_v40  ;;  %v1048_v42 = vmul.f32 %v1593_v37, %v2004_v54  ;;  %v1191_v2 = vpop.permute.xlu0 (%p737_p11), %1190 }
 0x6b3   : >> { %1423 = vmatprep.subr.bf16.mxu1 %v1677_v39  ;;  %v1049_v43 = vmul.f32 %v1595_v41, %v2002_v52 }
 0x6b5   : >> { %v1597_v44 = vpop.eup %1596  ;;  %v1058_v45 = vpack.c.bf16 %v1049_v43, %v1048_v42 }
 0x6b6   : >> { %v1599_v46 = vpop.eup %1598  ;;  %v1050_v47 = vmul.f32 %v1597_v44, %v2010_v55  ;;  %v1602_v55 = vld [vmem:[%s2130_s5] sm:$0xff] (%p737_p11)  }
 0x6b7   : >> { %v1051_v49 = vmul.f32 %v1599_v46, %v2008_v53  ;;  %1435 = vmatprep.mubr.msk.bf16.mxu0 (%p737_p11), %vm623_vm1, %v1602_v55 }
 0x6b9   : >> { %v1059_v50 = vpack.c.bf16 %v1051_v49, %v1050_v47 }
 0x6ba   : >> { %1424 = vmatpush3.bf16.xpose.msra.mxu1 %v1058_v45 }
 0x6bb   : >> { %1425 = vmatprep.subr.bf16.mxu1 %v1677_v39 }
 0x6c2   : >> { %1426 = vmatpush3.bf16.xpose.msra.mxu1 %v1059_v50 }
 0x6c9   : >> { %1428 = vmatmul.mubr.bf16.vlgmr.msra.gmra.mrb[0].mxu1 %v746_v48 }
 0x6ff   : > { %v1201_v62 = vpop.permute.xlu1 (%p737_p11), %1200 }
 0x704   : > { %v1206_v17 = vpop.permute.xlu1 (%p737_p11), %1205 }
 0x706   : > { %v1196_v21 = vpop.permute.xlu0 (%p737_p11), %1195 }
 0x79b   : > { %739 = sbr.rel (!%p737_p11) target bundleno = 1034 (0x40a), region = 94 }
 0x79c   : >> { %v1094_v51 = vpop.f32.mrb[0].mxu1 }
 0x79d   : >> { %v1429_v54 = vpop.f32.mrb[1].mxu1 }
 0x79e   : >> { %v1097_v56 = vpop.f32.mrb[2].mxu1 }
 0x79f   : >> { %v1101_v52 = vpack.c.bf16 %v1097_v56, %v1094_v51  ;;  %v1430_v57 = vpop.f32.mrb[3].mxu1 }
 0x7a1   : >> { %1104 = vst [vmem:[%s1103_s13] sm:$0xff] %v1101_v52 }
 0x7a8   : > { %v1105_v39 = vld [vmem:[#allocation5] sm:$0xff]  ;;  %v1106_v53 = vld [vmem:[#allocation5 + $0x8] sm:$0xff] }
 0x7a9   : > { %1431 = vmatprep.subr.bf16.mxu0 %v1105_v39 }
 0x7aa   : > { %1432 = vmatpush3.bf16.msra.mxu0 %v1105_v39 }
 0x7ab   : > { %1433 = vmatprep.subr.bf16.mxu0 %v1106_v53 }
 0x7ae   : > { %1434 = vmatpush3.bf16.msra.mxu0 %v1106_v53 }
 0x7b1   : > { %1436 = vmatmul.mubr.msk.bf16.vlgmr.msra.gmra.mrb[0].mxu0 %vm623_vm1, %v1603_v59 }
 0x884   : > { %v1437_v4 = vpop.f32.mrb[0].mxu0 }
 0x885   : > { %v1182_v7 = vadd.f32 %v1437_v4, %v1178_v63  ;;  %v1161_v8 = vpop.f32.mrb[1].mxu0 }
 0x886   : > { %v1180_v11 = vadd.f32 %v1176_v3, %v1161_v8  ;;  %v1438_v12 = vpop.f32.mrb[2].mxu0 }
 0x887   : > { %v1210_v5 = vadd.f32 %v1201_v62, %v1182_v7  ;;  %v1183_v14 = vadd.f32 %v1438_v12, %v1179_v0  ;;  %v1164_v1 = vpop.f32.mrb[3].mxu0 }
 0x888   : > { %v1208_v18 = vadd.f32 %v1191_v2, %v1180_v11  ;;  %v1181_v19 = vadd.f32 %v1177_v9, %v1164_v1 }
 0x889   : > { %1214 = vst [vmem:[%s1905_s22 + $0x10] sm:$0xff] %v1210_v5  ;;  %v1211_v10 = vadd.f32 %v1206_v17, %v1183_v14 }
 0x88a   : > { %1212 = vst [vmem:[%s1905_s22] sm:$0xff] %v1208_v18  ;;  %v1209_v22 = vadd.f32 %v1196_v21, %v1181_v19 }
 0x88b   : > { %1215 = vst [vmem:[%s1905_s22 + $0x18] sm:$0xff] %v1211_v10 }
 0x88c   : > { %1213 = vst [vmem:[%s1905_s22 + $0x8] sm:$0xff] %v1209_v22 }
 0x88d   : > { %1617 = shalt.err (!%p1614_p4)
}
 0x88e   : > { %s1618_s22 = scalar_lea.hbm %s2075_s21, 512  ;;  %s1622_s13 = scalar_lea.hbm %s2132_s7, 1024 }
 0x88f   : > { %p1619_p7 = scmp.ne.s32.totalorder %s2075_s21, %s1618_s22  ;;  %p1623_p10 = scmp.lt.u32.totalorder %s2075_s21, %s2132_s7 }
 0x890   : > { %p1624_p11 = scmp.lt.u32.totalorder %s1622_s13, %s1618_s22  ;;  %p1626_p13 = scmp.lt.u32.totalorder %s1618_s22, %s2075_s21 }
 0x891   : > { %p1620_p8 = pnand %p1619_p7, %p1760_p5 }
 0x892   : > { %p1625_p12 = por %p1624_p11, %p1623_p10 }
 0x893   : > { %p1621_p9 = pneg %p1620_p8 }
 0x894   : > { %p1627_p0 = por %p1626_p13, %p1625_p12 }
 0x896   : > { %p1628_p1 = pnand %p1627_p0, %p1621_p9 }
 0x898   : > { %1631 = shalt.err (!%p1628_p1)
}
 0x899   : > { %s1680_s17 = smov 128   ;;  %s1681_s28 = smov 8  }
 0x89a   : > { %1467 = dma.vmem_to_hbm [thread:$0]  (%p1760_p5), %s2077_s16, 512, %s2075_s21, %s2084_s23, %s1680_s17, %s1680_s17, %s1681_s28  }
 0x89b PF: > { %p1473_p2 = scmp.ge.s32.totalorder %s1670_s27, 2  ;;  %s1245_s20 = sand.u32 1, %s1658_s24  }
 0x89c   : > { %s1246_s18 = scalar_lea.sflag [#allocation7], %s1245_s20 }
 0x89d   : > { %p1470_p3 = pnand %p1473_p2, %p1764_p6 }
 0x89f   : > { %1653 = dma.done.wait (!%p1470_p3), %s1246_s18, 512  }
 0x8a0   : > { %1655 = vsyncadd (!%p1470_p3), %s1246_s18, 4294966784  ;;  %p17_p4 = scmp.ge.s32.totalorder %s1747_s30, 4   ;;  %s2137_s24 = smov %s1662_s25 }
 0x8a1   : > { %s2138_s25 = smov %s1666_s26  ;;  %s2139_s26 = smov %s1758_s10 }
 0x8a2   : > { %s2140_s27 = smov %s1747_s30  ;;  %19 = sbr.rel (!%p17_p4) target bundleno = 3 (0x3), region = 105 }
 0x8a9   :  { %1251 = vsyncpa [#allocation7], 1 }
 0x8aa   :  { %1253 = vsyncpa [#allocation7 + $0x1], 1 }

</bundles_post_ra>
